<compile_context>
chip_gen: v7x
topology: tpu7x:2x2x1
jax: 0.10.0
libtpu: 0.0.40
codegen_flags: <defaults>
</compile_context>

<pallas_src>
import jax
import jax.numpy as jnp
from jax.experimental import pallas as pl
from jax.experimental.pallas import tpu as pltpu


def mixer_block_kernel(
    x_ref,
    ln1w_ref, ln1b_ref,
    wt1_ref, bt1_ref,
    wt2_ref, bt2_ref,
    ln2w_ref, ln2b_ref,
    wc1_ref, bc1_ref,
    wc2_ref, bc2_ref,
    o_ref,
):
    BB, P, D = x_ref.shape
    T = wt1_ref.shape[0]

    xb = x_ref[...].astype(jnp.float32)                       # (BB, P, D)
    x2d = xb.reshape(BB * P, D)                                # sublane-aligned merge

    # ---- LayerNorm 1 (over D) -- single-pass statistics ----
    mu = jnp.mean(x2d, axis=-1, keepdims=True)
    msq = jnp.mean(x2d * x2d, axis=-1, keepdims=True)
    inv = jax.lax.rsqrt(msq - mu * mu + 1e-5)
    y = (x2d - mu) * inv * ln1w_ref[...] + ln1b_ref[...]       # (BB*P, D) f32

    # ---- Token-mixing MLP: left-multiplied, no activation transposes ----
    y3 = y.reshape(BB, P, D).astype(jnp.bfloat16)
    w1 = jnp.broadcast_to(wt1_ref[...], (BB, T, P))            # tiny bf16 weight
    h = jax.lax.dot_general(w1, y3, (((2,), (1,)), ((0,), (0,))),
                            preferred_element_type=jnp.float32)  # (BB, T, D)
    h = h + bt1_ref[...]                                       # (T, 1) row bias
    h = h * jax.nn.sigmoid(h)                                  # Swish (EUP)
    w2 = jnp.broadcast_to(wt2_ref[...], (BB, P, T))
    t = jax.lax.dot_general(w2, h.astype(jnp.bfloat16),
                            (((2,), (1,)), ((0,), (0,))),
                            preferred_element_type=jnp.float32)  # (BB, P, D)
    t = t + bt2_ref[...]                                       # (P, 1) row bias

    x1 = xb + t                                                # residual, (BB, P, D)
    x1_2d = x1.reshape(BB * P, D)

    # ---- LayerNorm 2 ----
    mu2 = jnp.mean(x1_2d, axis=-1, keepdims=True)
    msq2 = jnp.mean(x1_2d * x1_2d, axis=-1, keepdims=True)
    inv2 = jax.lax.rsqrt(msq2 - mu2 * mu2 + 1e-5)
    y2 = (x1_2d - mu2) * inv2 * ln2w_ref[...] + ln2b_ref[...]

    # ---- Channel-mixing MLP ----
    h2 = jnp.dot(y2.astype(jnp.bfloat16), wc1_ref[...],
                 preferred_element_type=jnp.float32)           # (BB*P, C)
    h2 = h2 + bc1_ref[...]
    h2 = h2 * jax.nn.sigmoid(h2)
    c = jnp.dot(h2.astype(jnp.bfloat16), wc2_ref[...],
                preferred_element_type=jnp.float32)            # (BB*P, D)
    c = c + bc2_ref[...]

    o_ref[...] = (x1_2d + c).reshape(BB, P, D).astype(o_ref.dtype)


def _row_scale(v, g, eps=1e-12):
    """v: (out, in) PyTorch layout. Per-row weight-norm scale g / max(||row||, eps)."""
    norm = jnp.sqrt(jnp.sum(v * v, axis=1))
    return g / jnp.maximum(norm, eps)


def _choose_block_batch(B, P, target_rows=128):
    """Pick batch-block size: BB*P >= target_rows if possible, grid >= 2 if possible."""
    divisors = [d for d in range(1, B + 1) if B % d == 0]
    cands = [d for d in divisors if B // d >= 2] or [B]
    for d in cands:
        if d * P >= target_rows:
            return d
    return cands[-1]


def _const_spec(shape):
    """Constant operand: full block, same index every step, single-buffered."""
    index_map = lambda b: (0,) * len(shape)
    try:
        return pl.BlockSpec(shape, index_map, pipeline_mode=pl.Buffered(1))
    except (AttributeError, TypeError):   # older jax without pipeline_mode / Buffered
        return pl.BlockSpec(shape, index_map)


def mixer_block_forward(x, params):
    """x: (B, P, D) float32. params hold PyTorch-layout weights (weight_v is (out, in))."""
    B, P, D = x.shape
    T = params["token_v1"].shape[0]
    C = params["chan_v1"].shape[0]
    bf16, f32 = jnp.bfloat16, jnp.float32

    # Weight-norm scale folded into bf16 weights (computed once, outside the grid loop).
    wt1 = (params["token_v1"] *
           _row_scale(params["token_v1"], params["token_g1"])[:, None]).astype(bf16)      # (T, P)
    wt2 = (params["token_v2"] *
           _row_scale(params["token_v2"], params["token_g2"])[:, None]).astype(bf16)      # (P, T)
    wc1 = (params["chan_v1"] *
           _row_scale(params["chan_v1"], params["chan_g1"])[:, None]).T.astype(bf16)      # (D, C)
    wc2 = (params["chan_v2"] *
           _row_scale(params["chan_v2"], params["chan_g2"])[:, None]).T.astype(bf16)      # (C, D)

    bt1 = params["token_b1"].reshape(T, 1).astype(f32)
    bt2 = params["token_b2"].reshape(P, 1).astype(f32)
    bc1 = params["chan_b1"].reshape(1, C).astype(f32)
    bc2 = params["chan_b2"].reshape(1, D).astype(f32)
    ln1w = params["ln1_w"].reshape(1, D).astype(f32)
    ln1b = params["ln1_b"].reshape(1, D).astype(f32)
    ln2w = params["ln2_w"].reshape(1, D).astype(f32)
    ln2b = params["ln2_b"].reshape(1, D).astype(f32)

    BB = _choose_block_batch(B, P)
    grid = (B // BB,)

    # Explicit VMEM budget: double-buffered x/out blocks, single-buffered
    # constants, live f32 intermediates, plus fixed headroom.
    itemsize = x.dtype.itemsize
    block_bytes = BB * P * D * itemsize
    weight_bytes = 2 * (T * P + P * T + D * C + C * D)             # bf16 weights
    vec_bytes = 4 * (4 * D + T + P + C + D)                        # f32 LN params / biases
    interm_bytes = 4 * (4 * BB * P * D + 2 * BB * T * D + 2 * BB * P * C)
    vmem_limit = int(min(100 * (1 << 20),
                         4 * block_bytes + weight_bytes + vec_bytes
                         + interm_bytes + (8 << 20)))

    cost = pl.CostEstimate(
        flops=int(4 * B * P * D * (T + C)),
        transcendentals=int(B * (T * D + P * C)),
        bytes_accessed=int(2 * B * P * D * itemsize + weight_bytes + vec_bytes),
    )

    grid_spec = pltpu.PrefetchScalarGridSpec(
        num_scalar_prefetch=0,
        grid=grid,
        in_specs=[
            pl.BlockSpec((BB, P, D), lambda b: (b, 0, 0)),          # x slab per step
            _const_spec((1, D)), _const_spec((1, D)),               # ln1 w/b
            _const_spec((T, P)), _const_spec((T, 1)),               # token layer 1 (w, b)
            _const_spec((P, T)), _const_spec((P, 1)),               # token layer 2 (w, b)
            _const_spec((1, D)), _const_spec((1, D)),               # ln2 w/b
            _const_spec((D, C)), _const_spec((1, C)),               # channel layer 1 (w, b)
            _const_spec((C, D)), _const_spec((1, D)),               # channel layer 2 (w, b)
        ],
        out_specs=pl.BlockSpec((BB, P, D), lambda b: (b, 0, 0)),
    )

    return pl.pallas_call(
        mixer_block_kernel,
        out_shape=jax.ShapeDtypeStruct((B, P, D), x.dtype),
        grid_spec=grid_spec,
        compiler_params=pltpu.CompilerParams(
            dimension_semantics=("parallel",),   # batch blocks shard across TCs on v7x
            vmem_limit_bytes=vmem_limit,
        ),
        cost_estimate=cost,
    )(x, ln1w, ln1b, wt1, bt1, wt2, bt2, ln2w, ln2b, wc1, bc1, wc2, bc2)


def mixer_block_reference(x, params):
    """Pure-JAX f32 reference mirroring the PyTorch MixerBlock forward."""
    def wnl(z, v, g, b):
        # v: (out, in) PyTorch layout; F.normalize over in_features (dim=1).
        n = jnp.sqrt(jnp.sum(v * v, axis=1, keepdims=True))
        w = v / jnp.maximum(n, 1e-12) * g[:, None]
        return z @ w.T + b

    def ln(z, w, b, eps=1e-5):
        mu = jnp.mean(z, axis=-1, keepdims=True)
        var = jnp.mean((z - mu) ** 2, axis=-1, keepdims=True)
        return (z - mu) / jnp.sqrt(var + eps) * w + b

    def swish(z):
        return z * jax.nn.sigmoid(z)

    y = ln(x, params["ln1_w"], params["ln1_b"])
    y = jnp.swapaxes(y, 1, 2)                                  # (B, D, P)
    y = wnl(y, params["token_v1"], params["token_g1"], params["token_b1"])
    y = swish(y)
    y = wnl(y, params["token_v2"], params["token_g2"], params["token_b2"])
    y = jnp.swapaxes(y, 1, 2)                                  # (B, P, D)
    x = x + y
    y = ln(x, params["ln2_w"], params["ln2_b"])
    y = wnl(y, params["chan_v1"], params["chan_g1"], params["chan_b1"])
    y = swish(y)
    y = wnl(y, params["chan_v2"], params["chan_g2"], params["chan_b2"])
    return x + y


if __name__ == "__main__":
    # Small shapes; dim lane-dense (128), batch large enough to demonstrate
    # multi-batch blocks (BB=8 -> 128 MXU rows) with an even grid of 2.
    batch, num_patches, dim = 16, 16, 128
    token_mlp_dim, channel_mlp_dim = 32, 256

    keys = jax.random.split(jax.random.PRNGKey(0), 20)
    x = jax.random.normal(keys[0], (batch, num_patches, dim), dtype=jnp.float32)

    f32 = jnp.float32
    params = {
        "ln1_w": 1.0 + 0.1 * jax.random.normal(keys[1], (dim,), f32),
        "ln1_b": 0.1 * jax.random.normal(keys[2], (dim,), f32),
        "token_v1": jax.random.normal(keys[3], (token_mlp_dim, num_patches), f32),
        "token_g1": 1.0 + 0.1 * jax.random.normal(keys[4], (token_mlp_dim,), f32),
        "token_b1": 0.1 * jax.random.normal(keys[5], (token_mlp_dim,), f32),
        "token_v2": jax.random.normal(keys[6], (num_patches, token_mlp_dim), f32),
        "token_g2": 1.0 + 0.1 * jax.random.normal(keys[7], (num_patches,), f32),
        "token_b2": 0.1 * jax.random.normal(keys[8], (num_patches,), f32),
        "ln2_w": 1.0 + 0.1 * jax.random.normal(keys[9], (dim,), f32),
        "ln2_b": 0.1 * jax.random.normal(keys[10], (dim,), f32),
        "chan_v1": jax.random.normal(keys[11], (channel_mlp_dim, dim), f32),
        "chan_g1": 1.0 + 0.1 * jax.random.normal(keys[12], (channel_mlp_dim,), f32),
        "chan_b1": 0.1 * jax.random.normal(keys[13], (channel_mlp_dim,), f32),
        "chan_v2": jax.random.normal(keys[14], (dim, channel_mlp_dim), f32),
        "chan_g2": 1.0 + 0.1 * jax.random.normal(keys[15], (dim,), f32),
        "chan_b2": 0.1 * jax.random.normal(keys[16], (dim,), f32),
    }

    out = mixer_block_forward(x, params)
    out = jax.block_until_ready(out)

    ref = mixer_block_reference(x, params)
    assert out.shape == (batch, num_patches, dim)
    max_err = jnp.max(jnp.abs(out - ref))
    # Tolerance loosened for the bf16-MXU path (f32 reference).
    assert jnp.allclose(out, ref, atol=7.5e-2, rtol=5e-2), f"max abs err = {max_err}"

    print("KERNEL_OK")
</pallas_src>

<mosaic_0001>
module attributes {stable_mosaic.version = 11 : i64} {
  func.func @mixer_block_kernel(%arg0: i32, %arg1: memref<8x16x128xf32, #tpu.memory_space<vmem>>, %arg2: memref<1x128xf32, #tpu.memory_space<vmem>>, %arg3: memref<1x128xf32, #tpu.memory_space<vmem>>, %arg4: memref<32x16xbf16, #tpu.memory_space<vmem>>, %arg5: memref<32x1xf32, #tpu.memory_space<vmem>>, %arg6: memref<16x32xbf16, #tpu.memory_space<vmem>>, %arg7: memref<16x1xf32, #tpu.memory_space<vmem>>, %arg8: memref<1x128xf32, #tpu.memory_space<vmem>>, %arg9: memref<1x128xf32, #tpu.memory_space<vmem>>, %arg10: memref<128x256xbf16, #tpu.memory_space<vmem>>, %arg11: memref<1x256xf32, #tpu.memory_space<vmem>>, %arg12: memref<256x128xbf16, #tpu.memory_space<vmem>>, %arg13: memref<1x128xf32, #tpu.memory_space<vmem>>, %arg14: memref<8x16x128xf32, #tpu.memory_space<vmem>>) attributes {dimension_semantics = [#tpu.dimension_semantics<parallel>], iteration_bounds = array<i64: 2>, scalar_prefetch = 0 : i64, scratch_operands = 0 : i64, tpu.core_type = #tpu.core_type<tc>, window_params = [{transform_indices = @transform_0, window_bounds = array<i64: 8, 16, 128>}, {pipeline_mode = #tpu.pipeline_mode<synchronous>, transform_indices = @transform_1, window_bounds = array<i64: 1, 128>}, {pipeline_mode = #tpu.pipeline_mode<synchronous>, transform_indices = @transform_2, window_bounds = array<i64: 1, 128>}, {pipeline_mode = #tpu.pipeline_mode<synchronous>, transform_indices = @transform_3, window_bounds = array<i64: 32, 16>}, {pipeline_mode = #tpu.pipeline_mode<synchronous>, transform_indices = @transform_4, window_bounds = array<i64: 32, 1>}, {pipeline_mode = #tpu.pipeline_mode<synchronous>, transform_indices = @transform_5, window_bounds = array<i64: 16, 32>}, {pipeline_mode = #tpu.pipeline_mode<synchronous>, transform_indices = @transform_6, window_bounds = array<i64: 16, 1>}, {pipeline_mode = #tpu.pipeline_mode<synchronous>, transform_indices = @transform_7, window_bounds = array<i64: 1, 128>}, {pipeline_mode = #tpu.pipeline_mode<synchronous>, transform_indices = @transform_8, window_bounds = array<i64: 1, 128>}, {pipeline_mode = #tpu.pipeline_mode<synchronous>, transform_indices = @transform_9, window_bounds = array<i64: 128, 256>}, {pipeline_mode = #tpu.pipeline_mode<synchronous>, transform_indices = @transform_10, window_bounds = array<i64: 1, 256>}, {pipeline_mode = #tpu.pipeline_mode<synchronous>, transform_indices = @transform_11, window_bounds = array<i64: 256, 128>}, {pipeline_mode = #tpu.pipeline_mode<synchronous>, transform_indices = @transform_12, window_bounds = array<i64: 1, 128>}, {transform_indices = @transform_13, window_bounds = array<i64: 8, 16, 128>}]} {
    %c0 = arith.constant 0 : index
    %c0_0 = arith.constant 0 : index
    %c0_1 = arith.constant 0 : index
    %0 = vector.load %arg1[%c0, %c0_0, %c0_1] : memref<8x16x128xf32, #tpu.memory_space<vmem>>, vector<8x16x128xf32>
    %1 = vector.shape_cast %0 : vector<8x16x128xf32> to vector<128x128xf32>
    %cst = arith.constant dense<0.000000e+00> : vector<128xf32>
    %2 = vector.multi_reduction <add>, %1, %cst [1] : vector<128x128xf32> to vector<128xf32>
    %3 = vector.shape_cast %2 : vector<128xf32> to vector<128x1xf32>
    %cst_2 = arith.constant 1.280000e+02 : f32
    %4 = vector.broadcast %cst_2 : f32 to vector<128x1xf32>
    %5 = arith.divf %3, %4 : vector<128x1xf32>
    %6 = arith.mulf %1, %1 : vector<128x128xf32>
    %cst_3 = arith.constant dense<0.000000e+00> : vector<128xf32>
    %7 = vector.multi_reduction <add>, %6, %cst_3 [1] : vector<128x128xf32> to vector<128xf32>
    %8 = vector.shape_cast %7 : vector<128xf32> to vector<128x1xf32>
    %cst_4 = arith.constant 1.280000e+02 : f32
    %9 = vector.broadcast %cst_4 : f32 to vector<128x1xf32>
    %10 = arith.divf %8, %9 : vector<128x1xf32>
    %11 = arith.mulf %5, %5 : vector<128x1xf32>
    %12 = arith.subf %10, %11 : vector<128x1xf32>
    %cst_5 = arith.constant 9.99999974E-6 : f32
    %13 = vector.broadcast %cst_5 : f32 to vector<128x1xf32>
    %14 = arith.addf %12, %13 : vector<128x1xf32>
    %15 = math.rsqrt %14 : vector<128x1xf32>
    %16 = vector.broadcast %5 : vector<128x1xf32> to vector<128x128xf32>
    %17 = arith.subf %1, %16 : vector<128x128xf32>
    %18 = vector.broadcast %15 : vector<128x1xf32> to vector<128x128xf32>
    %19 = arith.mulf %17, %18 : vector<128x128xf32>
    %c0_6 = arith.constant 0 : index
    %c0_7 = arith.constant 0 : index
    %20 = vector.load %arg2[%c0_6, %c0_7] : memref<1x128xf32, #tpu.memory_space<vmem>>, vector<1x128xf32>
    %21 = vector.broadcast %20 : vector<1x128xf32> to vector<128x128xf32>
    %22 = arith.mulf %19, %21 : vector<128x128xf32>
    %c0_8 = arith.constant 0 : index
    %c0_9 = arith.constant 0 : index
    %23 = vector.load %arg3[%c0_8, %c0_9] : memref<1x128xf32, #tpu.memory_space<vmem>>, vector<1x128xf32>
    %24 = vector.broadcast %23 : vector<1x128xf32> to vector<128x128xf32>
    %25 = arith.addf %22, %24 : vector<128x128xf32>
    %26 = vector.shape_cast %25 : vector<128x128xf32> to vector<8x16x128xf32>
    %27 = arith.truncf %26 : vector<8x16x128xf32> to vector<8x16x128xbf16>
    %c0_10 = arith.constant 0 : index
    %c0_11 = arith.constant 0 : index
    %28 = vector.load %arg4[%c0_10, %c0_11] : memref<32x16xbf16, #tpu.memory_space<vmem>>, vector<32x16xbf16>
    %29 = vector.shape_cast %28 : vector<32x16xbf16> to vector<1x32x16xbf16>
    %30 = vector.broadcast %29 : vector<1x32x16xbf16> to vector<8x32x16xbf16>
    %cst_12 = arith.constant dense<0.000000e+00> : vector<8x32x128xf32>
    %31 = tpu.matmul %30, %27, %cst_12 {dimension_numbers = #tpu.dot_dimension_numbers<[2], [1], [1], [2], [0, 0, 0, 1, 1, 2], [0], [0]>} : vector<8x32x16xbf16>, vector<8x16x128xbf16>, vector<8x32x128xf32> -> vector<8x32x128xf32>
    %c0_13 = arith.constant 0 : index
    %c0_14 = arith.constant 0 : index
    %32 = vector.load %arg5[%c0_13, %c0_14] : memref<32x1xf32, #tpu.memory_space<vmem>>, vector<32x1xf32>
    %33 = vector.shape_cast %32 : vector<32x1xf32> to vector<1x32x1xf32>
    %34 = vector.broadcast %33 : vector<1x32x1xf32> to vector<8x32x128xf32>
    %35 = arith.addf %31, %34 : vector<8x32x128xf32>
    %36 = arith.negf %35 : vector<8x32x128xf32>
    %37 = math.exp %36 : vector<8x32x128xf32>
    %cst_15 = arith.constant 1.000000e+00 : f32
    %38 = vector.broadcast %cst_15 : f32 to vector<8x32x128xf32>
    %39 = arith.addf %38, %37 : vector<8x32x128xf32>
    %40 = arith.divf %38, %39 : vector<8x32x128xf32>
    %41 = arith.mulf %35, %40 : vector<8x32x128xf32>
    %c0_16 = arith.constant 0 : index
    %c0_17 = arith.constant 0 : index
    %42 = vector.load %arg6[%c0_16, %c0_17] : memref<16x32xbf16, #tpu.memory_space<vmem>>, vector<16x32xbf16>
    %43 = vector.shape_cast %42 : vector<16x32xbf16> to vector<1x16x32xbf16>
    %44 = vector.broadcast %43 : vector<1x16x32xbf16> to vector<8x16x32xbf16>
    %45 = arith.truncf %41 : vector<8x32x128xf32> to vector<8x32x128xbf16>
    %cst_18 = arith.constant dense<0.000000e+00> : vector<8x16x128xf32>
    %46 = tpu.matmul %44, %45, %cst_18 {dimension_numbers = #tpu.dot_dimension_numbers<[2], [1], [1], [2], [0, 0, 0, 1, 1, 2], [0], [0]>} : vector<8x16x32xbf16>, vector<8x32x128xbf16>, vector<8x16x128xf32> -> vector<8x16x128xf32>
    %c0_19 = arith.constant 0 : index
    %c0_20 = arith.constant 0 : index
    %47 = vector.load %arg7[%c0_19, %c0_20] : memref<16x1xf32, #tpu.memory_space<vmem>>, vector<16x1xf32>
    %48 = vector.shape_cast %47 : vector<16x1xf32> to vector<1x16x1xf32>
    %49 = vector.broadcast %48 : vector<1x16x1xf32> to vector<8x16x128xf32>
    %50 = arith.addf %46, %49 : vector<8x16x128xf32>
    %51 = arith.addf %0, %50 : vector<8x16x128xf32>
    %52 = vector.shape_cast %51 : vector<8x16x128xf32> to vector<128x128xf32>
    %cst_21 = arith.constant dense<0.000000e+00> : vector<128xf32>
    %53 = vector.multi_reduction <add>, %52, %cst_21 [1] : vector<128x128xf32> to vector<128xf32>
    %54 = vector.shape_cast %53 : vector<128xf32> to vector<128x1xf32>
    %cst_22 = arith.constant 1.280000e+02 : f32
    %55 = vector.broadcast %cst_22 : f32 to vector<128x1xf32>
    %56 = arith.divf %54, %55 : vector<128x1xf32>
    %57 = arith.mulf %52, %52 : vector<128x128xf32>
    %cst_23 = arith.constant dense<0.000000e+00> : vector<128xf32>
    %58 = vector.multi_reduction <add>, %57, %cst_23 [1] : vector<128x128xf32> to vector<128xf32>
    %59 = vector.shape_cast %58 : vector<128xf32> to vector<128x1xf32>
    %cst_24 = arith.constant 1.280000e+02 : f32
    %60 = vector.broadcast %cst_24 : f32 to vector<128x1xf32>
    %61 = arith.divf %59, %60 : vector<128x1xf32>
    %62 = arith.mulf %56, %56 : vector<128x1xf32>
    %63 = arith.subf %61, %62 : vector<128x1xf32>
    %cst_25 = arith.constant 9.99999974E-6 : f32
    %64 = vector.broadcast %cst_25 : f32 to vector<128x1xf32>
    %65 = arith.addf %63, %64 : vector<128x1xf32>
    %66 = math.rsqrt %65 : vector<128x1xf32>
    %67 = vector.broadcast %56 : vector<128x1xf32> to vector<128x128xf32>
    %68 = arith.subf %52, %67 : vector<128x128xf32>
    %69 = vector.broadcast %66 : vector<128x1xf32> to vector<128x128xf32>
    %70 = arith.mulf %68, %69 : vector<128x128xf32>
    %c0_26 = arith.constant 0 : index
    %c0_27 = arith.constant 0 : index
    %71 = vector.load %arg8[%c0_26, %c0_27] : memref<1x128xf32, #tpu.memory_space<vmem>>, vector<1x128xf32>
    %72 = vector.broadcast %71 : vector<1x128xf32> to vector<128x128xf32>
    %73 = arith.mulf %70, %72 : vector<128x128xf32>
    %c0_28 = arith.constant 0 : index
    %c0_29 = arith.constant 0 : index
    %74 = vector.load %arg9[%c0_28, %c0_29] : memref<1x128xf32, #tpu.memory_space<vmem>>, vector<1x128xf32>
    %75 = vector.broadcast %74 : vector<1x128xf32> to vector<128x128xf32>
    %76 = arith.addf %73, %75 : vector<128x128xf32>
    %77 = arith.truncf %76 : vector<128x128xf32> to vector<128x128xbf16>
    %c0_30 = arith.constant 0 : index
    %c0_31 = arith.constant 0 : index
    %78 = vector.load %arg10[%c0_30, %c0_31] : memref<128x256xbf16, #tpu.memory_space<vmem>>, vector<128x256xbf16>
    %cst_32 = arith.constant dense<0.000000e+00> : vector<128x256xf32>
    %79 = tpu.matmul %77, %78, %cst_32 {dimension_numbers = #tpu.dot_dimension_numbers<[1], [0], [0], [1], [0, 0, 1, 1], [], []>} : vector<128x128xbf16>, vector<128x256xbf16>, vector<128x256xf32> -> vector<128x256xf32>
    %c0_33 = arith.constant 0 : index
    %c0_34 = arith.constant 0 : index
    %80 = vector.load %arg11[%c0_33, %c0_34] : memref<1x256xf32, #tpu.memory_space<vmem>>, vector<1x256xf32>
    %81 = vector.broadcast %80 : vector<1x256xf32> to vector<128x256xf32>
    %82 = arith.addf %79, %81 : vector<128x256xf32>
    %83 = arith.negf %82 : vector<128x256xf32>
    %84 = math.exp %83 : vector<128x256xf32>
    %cst_35 = arith.constant 1.000000e+00 : f32
    %85 = vector.broadcast %cst_35 : f32 to vector<128x256xf32>
    %86 = arith.addf %85, %84 : vector<128x256xf32>
    %87 = arith.divf %85, %86 : vector<128x256xf32>
    %88 = arith.mulf %82, %87 : vector<128x256xf32>
    %89 = arith.truncf %88 : vector<128x256xf32> to vector<128x256xbf16>
    %c0_36 = arith.constant 0 : index
    %c0_37 = arith.constant 0 : index
    %90 = vector.load %arg12[%c0_36, %c0_37] : memref<256x128xbf16, #tpu.memory_space<vmem>>, vector<256x128xbf16>
    %cst_38 = arith.constant dense<0.000000e+00> : vector<128x128xf32>
    %91 = tpu.matmul %89, %90, %cst_38 {dimension_numbers = #tpu.dot_dimension_numbers<[1], [0], [0], [1], [0, 0, 1, 1], [], []>} : vector<128x256xbf16>, vector<256x128xbf16>, vector<128x128xf32> -> vector<128x128xf32>
    %c0_39 = arith.constant 0 : index
    %c0_40 = arith.constant 0 : index
    %92 = vector.load %arg13[%c0_39, %c0_40] : memref<1x128xf32, #tpu.memory_space<vmem>>, vector<1x128xf32>
    %93 = vector.broadcast %92 : vector<1x128xf32> to vector<128x128xf32>
    %94 = arith.addf %91, %93 : vector<128x128xf32>
    %95 = arith.addf %52, %94 : vector<128x128xf32>
    %96 = vector.shape_cast %95 : vector<128x128xf32> to vector<8x16x128xf32>
    %c0_41 = arith.constant 0 : index
    %c0_42 = arith.constant 0 : index
    %c0_43 = arith.constant 0 : index
    %97 = vector.load %arg14[%c0_41, %c0_42, %c0_43] : memref<8x16x128xf32, #tpu.memory_space<vmem>>, vector<8x16x128xf32>
    tpu.vector_store %arg14[%c0_41, %c0_42, %c0_43], %96 {strides = array<i32>} : memref<8x16x128xf32, #tpu.memory_space<vmem>>, vector<8x16x128xf32>,
    return
  }
  func.func @transform_0(%arg0: i32) -> (i32, i32, i32) {
    %c0_i32 = arith.constant 0 : i32
    %c0_i32_0 = arith.constant 0 : i32
    %c0_i32_1 = arith.constant 0 : i32
    return %arg0, %c0_i32, %c0_i32_0 : i32, i32, i32
  }
  func.func @transform_1(%arg0: i32) -> (i32, i32) {
    %c0_i32 = arith.constant 0 : i32
    %c0_i32_0 = arith.constant 0 : i32
    %c0_i32_1 = arith.constant 0 : i32
    return %c0_i32, %c0_i32_0 : i32, i32
  }
  func.func @transform_2(%arg0: i32) -> (i32, i32) {
    %c0_i32 = arith.constant 0 : i32
    %c0_i32_0 = arith.constant 0 : i32
    %c0_i32_1 = arith.constant 0 : i32
    return %c0_i32, %c0_i32_0 : i32, i32
  }
  func.func @transform_3(%arg0: i32) -> (i32, i32) {
    %c0_i32 = arith.constant 0 : i32
    %c0_i32_0 = arith.constant 0 : i32
    %c0_i32_1 = arith.constant 0 : i32
    return %c0_i32, %c0_i32_0 : i32, i32
  }
  func.func @transform_4(%arg0: i32) -> (i32, i32) {
    %c0_i32 = arith.constant 0 : i32
    %c0_i32_0 = arith.constant 0 : i32
    %c0_i32_1 = arith.constant 0 : i32
    return %c0_i32, %c0_i32_0 : i32, i32
  }
  func.func @transform_5(%arg0: i32) -> (i32, i32) {
    %c0_i32 = arith.constant 0 : i32
    %c0_i32_0 = arith.constant 0 : i32
    %c0_i32_1 = arith.constant 0 : i32
    return %c0_i32, %c0_i32_0 : i32, i32
  }
  func.func @transform_6(%arg0: i32) -> (i32, i32) {
    %c0_i32 = arith.constant 0 : i32
    %c0_i32_0 = arith.constant 0 : i32
    %c0_i32_1 = arith.constant 0 : i32
    return %c0_i32, %c0_i32_0 : i32, i32
  }
  func.func @transform_7(%arg0: i32) -> (i32, i32) {
    %c0_i32 = arith.constant 0 : i32
    %c0_i32_0 = arith.constant 0 : i32
    %c0_i32_1 = arith.constant 0 : i32
    return %c0_i32, %c0_i32_0 : i32, i32
  }
  func.func @transform_8(%arg0: i32) -> (i32, i32) {
    %c0_i32 = arith.constant 0 : i32
    %c0_i32_0 = arith.constant 0 : i32
    %c0_i32_1 = arith.constant 0 : i32
    return %c0_i32, %c0_i32_0 : i32, i32
  }
  func.func @transform_9(%arg0: i32) -> (i32, i32) {
    %c0_i32 = arith.constant 0 : i32
    %c0_i32_0 = arith.constant 0 : i32
    %c0_i32_1 = arith.constant 0 : i32
    return %c0_i32, %c0_i32_0 : i32, i32
  }
  func.func @transform_10(%arg0: i32) -> (i32, i32) {
    %c0_i32 = arith.constant 0 : i32
    %c0_i32_0 = arith.constant 0 : i32
    %c0_i32_1 = arith.constant 0 : i32
    return %c0_i32, %c0_i32_0 : i32, i32
  }
  func.func @transform_11(%arg0: i32) -> (i32, i32) {
    %c0_i32 = arith.constant 0 : i32
    %c0_i32_0 = arith.constant 0 : i32
    %c0_i32_1 = arith.constant 0 : i32
    return %c0_i32, %c0_i32_0 : i32, i32
  }
  func.func @transform_12(%arg0: i32) -> (i32, i32) {
    %c0_i32 = arith.constant 0 : i32
    %c0_i32_0 = arith.constant 0 : i32
    %c0_i32_1 = arith.constant 0 : i32
    return %c0_i32, %c0_i32_0 : i32, i32
  }
  func.func @transform_13(%arg0: i32) -> (i32, i32, i32) {
    %c0_i32 = arith.constant 0 : i32
    %c0_i32_0 = arith.constant 0 : i32
    %c0_i32_1 = arith.constant 0 : i32
    return %arg0, %c0_i32, %c0_i32_0 : i32, i32, i32
  }
}

</mosaic_0001>

<bundles_post_ra>
// kernel: tpu_custom_call.1
= control target key start
LH: loop header
LB: loop body
LE: loop exit
PB: predicated region body
PF: predicated region fallthrough
CT: control target
= control target key end

     0   :  { %s5171_s0 = inlined_call_operand.hbm [shape: f32[16,16,128], index: 0, kind: input, shape index: {}]   ;;  %s5172_s1 = inlined_call_operand.vmem [shape: f32[1,128], index: 1, kind: input, shape index: {}]   ;;  %s5173_s2 = inlined_call_operand.vmem [shape: f32[1,128], index: 2, kind: input, shape index: {}]   ;;  %s5174_s3 = inlined_call_operand.vmem [shape: bf16[32,16], index: 3, kind: input, shape index: {}]   ;;  %s5175_s4 = inlined_call_operand.vmem [shape: f32[32,1], index: 4, kind: input, shape index: {}]   ;;  %s5176_s5 = inlined_call_operand.vmem [shape: bf16[16,32], index: 5, kind: input, shape index: {}]   ;;  %s5177_s6 = inlined_call_operand.vmem [shape: f32[16,1], index: 6, kind: input, shape index: {}]   ;;  %s5178_s7 = inlined_call_operand.vmem [shape: f32[1,128], index: 7, kind: input, shape index: {}]   ;;  %s5179_s8 = inlined_call_operand.vmem [shape: f32[1,128], index: 8, kind: input, shape index: {}]   ;;  %s5180_s9 = inlined_call_operand.hbm [shape: bf16[128,256], index: 9, kind: input, shape index: {}]   ;;  %s5181_s10 = inlined_call_operand.vmem [shape: f32[1,256], index: 10, kind: input, shape index: {}]   ;;  %s5182_s11 = inlined_call_operand.hbm [shape: bf16[256,128], index: 11, kind: input, shape index: {}]   ;;  %s5183_s12 = inlined_call_operand.vmem [shape: f32[1,128], index: 12, kind: input, shape index: {}]   ;;  %s5184_s13 = inlined_call_operand.hbm [shape: f32[16,16,128], index: 13, kind: output, shape index: {}]  }
   0x1   :  { %5193 = sst [smem:[#allocation14_spill]] %s5181_s10 }
   0x2   :  { %5194 = sst [smem:[#allocation15_spill]] %s5183_s12 }
   0x3   :  { %5195 = sst [smem:[#allocation16_spill]] %s5184_s13 }
   0x4   :  { %18 = vsyncpa [#allocation3], 0 }
   0x5   :  { %20 = vsyncpa [#allocation3 + $0x1], 0 }
   0x6   :  { %21 = vsyncpa [#allocation6], 0 }
   0x7   :  { %22 = vsyncpa [#allocation4], 0 }
   0x8   :  { %24 = vsyncpa [#allocation4 + $0x1], 0  ;;  %s3983_s25 = smov 0   ;;  %s3985_s26 = smov 0  }
   0x9   :  { %s3987_s27 = smov 0   ;;  %s3989_s28 = smov 0  }
   0xa LB: > { %5196 = sst [smem:[#allocation12_spill]] %s3886_s25  ;;  %s4004_s29 = sadd.s32 4294967295, %s3898_s28   ;;  %s3898_s28 = sphi %s3989_s28, %s5221_s28   ;;  %s3894_s27 = sphi %s3987_s27, %s5220_s27   ;;  %s3890_s26 = sphi %s3985_s26, %s5219_s26   ;;  %s3886_s25 = sphi %s3983_s25, %s5218_s25  }
   0xb   : > { %s2909_s30 = sadd.s32 4294967294, %s3898_s28   ;;  %p50_p0 = scmp.ne.s32.totalorder %s3890_s26, %s3886_s25 }
   0xc   : > { %p5187_p1 = scmp.eq.s32.totalorder %s4004_s29, 0  ;;  %p332_p3 = scmp.eq.s32.totalorder %s2909_s30, 1 }
   0xd   : > { %p2910_p5 = scmp.ge.s32.totalorder %s3898_s28, 1  ;;  %p339_p7 = scmp.lt.s32.totalorder %s3898_s28, 3 }
   0xe   : > { %p4013_p4 = por %p5187_p1, %p50_p0  ;;  %p4018_p6 = por %p332_p3, %p50_p0 }
   0xf   : > { %p4023_p8 = pnand %p2910_p5, %p339_p7  ;;  %s3900_s17 = smov [#allocation5]  }
  0x10   : > { %s5197_s14 = scalar_select %p4013_p4, 1, 0 }
  0x11   : > { %s5198_s15 = scalar_select %p4018_p6, 1, 0 }
  0x12   : > { %s375_s18 = sshll.u32 %s3900_s17, 4  ;;  %p3297_p9 = pneg %p4023_p8  ;;  %s4027_s18 = int_to_ptr.vmem [resolvable:$true] %s375_s18 }
  0x13   : > { %5199 = sst [smem:[#allocation13_spill]] %s5198_s15  ;;  %s3901_s20 = smov [#allocation7]  }
  0x14   : > { %p4034_p11 = pnand %p3297_p9, %p5187_p1  ;;  %s391_s21 = sshll.u32 %s3901_s20, 4  ;;  %s4038_s21 = int_to_ptr.vmem [resolvable:$true] %s391_s21 }
  0x15   : > { %s3742_s24 = scalar_lea.hbm %s5180_s9, 2048 }
  0x16   : > { %p3743_p12 = scmp.ne.s32.totalorder %s5180_s9, %s3742_s24  ;;  %p3744_p13 = pneg %p4034_p11 }
  0x17   : > { %p3749_p5 = scmp.lt.u32.totalorder %s3742_s24, %s5180_s9 }
  0x18   : > { %p3745_p0 = pnand %p3744_p13, %p3743_p12 }
  0x1a   : > { %p3746_p3 = pneg %p3745_p0 }
  0x1c   : > { %p3751_p7 = pnand %p3749_p5, %p3746_p3 }
  0x1e   : > { %3754 = shalt.err (!%p3751_p7)
}
  0x1f   : > { %s3755_s20 = scalar_lea.vmem %s4027_s18, 2048  ;;  %p3763_p2 = scmp.lt.s32.totalorder %s4027_s18, %s4027_s18 }
  0x20   : > { %p3756_p9 = scmp.ne.s32.totalorder %s4027_s18, %s3755_s20  ;;  %p3764_p12 = scmp.lt.s32.totalorder %s3755_s20, %s3755_s20 }
  0x22   : > { %p3758_p10 = pnand %p3756_p9, %p3744_p13  ;;  %p3765_p0 = por %p3764_p12, %p3763_p2 }
  0x24   : > { %p3759_p1 = pneg %p3758_p10 }
  0x26   : > { %p3766_p6 = pnand %p3765_p0, %p3759_p1 }
  0x28   : > { %3769 = shalt.err (!%p3766_p6)
}
  0x29   : > { %s5189_s25 = smov 128   ;;  %s5190_s15 = smov 8  }
  0x2a   : > { %3300 = dma.hbm_to_vmem [thread:$0]  (!%p4034_p11), %s5180_s9, 2048, %s4027_s18, [#allocation6], %s5189_s25, %s5189_s25, %s5190_s15  }
  0x2b   : > { %s3770_s17 = scalar_lea.hbm %s5182_s11, 2048 }
  0x2c   : > { %p3771_p1 = scmp.ne.s32.totalorder %s5182_s11, %s3770_s17  ;;  %p3777_p10 = scmp.lt.u32.totalorder %s3770_s17, %s5182_s11 }
  0x2e   : > { %p3773_p2 = pnand %p3771_p1, %p3744_p13 }
  0x30   : > { %p3774_p6 = pneg %p3773_p2 }
  0x32   : > { %p3779_p3 = pnand %p3777_p10, %p3774_p6 }
  0x34   : > { %3782 = shalt.err (!%p3779_p3)
}
  0x35   : > { %s3783_s18 = scalar_lea.vmem %s4038_s21, 2048  ;;  %p3791_p12 = scmp.lt.s32.totalorder %s4038_s21, %s4038_s21 }
  0x36   : > { %p3784_p5 = scmp.ne.s32.totalorder %s4038_s21, %s3783_s18  ;;  %p3792_p0 = scmp.lt.s32.totalorder %s3783_s18, %s3783_s18 }
  0x38   : > { %p3786_p7 = pnand %p3784_p5, %p3744_p13  ;;  %p3793_p1 = por %p3792_p0, %p3791_p12 }
  0x3a   : > { %p3787_p9 = pneg %p3786_p7 }
  0x3c   : > { %p3794_p2 = pnand %p3793_p1, %p3787_p9 }
  0x3e   : > { %3797 = shalt.err (!%p3794_p2)
}
  0x3f   : > { %s3904_s10 = smov 64   ;;  %s3905_s12 = smov 4  }
  0x40   : > { %3303 = dma.hbm_to_vmem [thread:$0]  (!%p4034_p11), %s5182_s11, 2048, %s4038_s21, [#allocation6], %s3904_s10, %s3904_s10, %s3905_s12  }
  0x41   : > { %s4096_s23 = sadd.s32 1, %s3898_s28   ;;  %s37_s30 = sadd.s32 1, %s3894_s27 }
  0x42   : > { %s34_s24 = ssub.s32 %s3898_s28, %s4096_s23  ;;  %p44_p6 = scmp.ne.s32.totalorder %s3894_s27, %s3890_s26 }
  0x43   : > { %p35_p13 = scmp.eq.s32.totalorder %s34_s24, 0  ;;  %p45_p10 = scmp.eq.s32.totalorder %s3898_s28, 0 }
  0x44   : > { %p5202_p5 = scmp.eq.s32.totalorder %s4004_s29, 1  ;;  %p3314_p9 = scmp.lt.s32.totalorder %s3898_s28, 2 }
  0x45   : > { %s4105_s17 = scalar_select %p35_p13, %s3894_s27, %s37_s30  }
  0x46   : > { %p46_p3 = por %p45_p10, %p44_p6  ;;  %p4109_p7 = por %p5202_p5, %p44_p6 }
  0x47   : > { %s408_s19 = sand.u32 1, %s3894_s27   ;;  %s3058_s21 = sshll.u32 %s3898_s28, 11 }
  0x48   : > { %s5203_s20 = scalar_select %p4109_p7, 1, 0 }
  0x49   : > { %s2914_s18 = sshll.u32 %s408_s19, 7  ;;  %s4119_s13 = scalar_lea.hbm %s5171_s0, %s3058_s21 }
  0x4a   : > { %s412_s22 = scalar_lea.vmem [#allocation2], %s2914_s18  ;;  %p4123_p11 = pnand %p3314_p9, %p46_p3 }
  0x4b   : > { %s420_s24 = sshll.u32 %s412_s22, 4  ;;  %s4127_s25 = scalar_lea.sflag [#allocation3], %s408_s19  ;;  %s4121_s24 = int_to_ptr.vmem [resolvable:$true] %s420_s24 }
  0x4c   : > { %s3798_s15 = scalar_lea.hbm %s4119_s13, 2048  ;;  %p3800_p0 = pneg %p4123_p11 }
  0x4d   : > { %p3799_p12 = scmp.ne.s32.totalorder %s4119_s13, %s3798_s15  ;;  %s3803_s10 = scalar_lea.hbm %s5171_s0, 4096 }
  0x4e   : > { %p3804_p13 = scmp.lt.u32.totalorder %s4119_s13, %s5171_s0  ;;  %p3805_p6 = scmp.lt.u32.totalorder %s3803_s10, %s3798_s15 }
  0x4f   : > { %p3801_p1 = pnand %p3800_p0, %p3799_p12  ;;  %p3807_p3 = scmp.lt.u32.totalorder %s3798_s15, %s4119_s13 }
  0x50   : > { %p3806_p10 = por %p3805_p6, %p3804_p13 }
  0x51   : > { %p3802_p2 = pneg %p3801_p1 }
  0x52   : > { %p3808_p5 = por %p3807_p3, %p3806_p10 }
  0x54   : > { %p3809_p9 = pnand %p3808_p5, %p3802_p2 }
  0x56   : > { %3812 = shalt.err (!%p3809_p9)
}
  0x57   : > { %s3813_s19 = scalar_lea.vmem %s4121_s24, 2048  ;;  %s3906_s18 = smov [#allocation2]  }
  0x58   : > { %p3814_p12 = scmp.ne.s32.totalorder %s4121_s24, %s3813_s19  ;;  %s3818_s21 = sshll.u32 %s3906_s18, 4  ;;  %s3819_s21 = int_to_ptr.vmem [resolvable:$false] %s3818_s21 }
  0x59   : > { %s3820_s12 = scalar_lea.vmem %s3819_s21, 4096  ;;  %p3821_p4 = scmp.lt.s32.totalorder %s4121_s24, %s3819_s21 }
  0x5a   : > { %p3816_p1 = pnand %p3814_p12, %p3800_p0  ;;  %p3822_p13 = scmp.lt.s32.totalorder %s3820_s12, %s3813_s19 }
  0x5c   : > { %p3817_p7 = pneg %p3816_p1  ;;  %p3823_p6 = por %p3822_p13, %p3821_p4 }
  0x5e   : > { %p3824_p10 = pnand %p3823_p6, %p3817_p7 }
  0x60   : > { %3827 = shalt.err (!%p3824_p10)
}
  0x61   : > { %s5205_s15 = smov 8   ;;  %s5206_s10 = smov 128  }
  0x62   : > { %3307 = dma.hbm_to_vmem [thread:$0]  (!%p4123_p11), %s4119_s13, 2048, %s4121_s24, %s4127_s25, %s5206_s10, %s5206_s10, %s5205_s15  }
  0x63   : > { %432 = sbr.rel (%p4023_p8) target bundleno = 1476 (0x5c4), region = 72  ;;  %s4161_s22 = sand.u32 (!%p4023_p8), 1, %s3890_s26  }
  0x64   : > { %s2919_s19 = sshll.u32 (!%p4023_p8), %s4161_s22, 7  ;;  %s435_s18 = scalar_lea.sflag (!%p4023_p8), [#allocation3], %s4161_s22 }
  0x65   : > { %s4167_s30 = scalar_lea.vmem (!%p4023_p8), [#allocation2], %s2919_s19  ;;  %p5207_p4 = scmp.ne.s32.totalorder (!%p4023_p8), %s5197_s14, 0 }
  0x6a   : > { %3873 = dma.done.wait (%p5207_p4), %s435_s18, 2048  }
  0x6b   : > { %3875 = vsyncadd (%p5207_p4), %s435_s18, 4294965248  ;;  %p5208_p7 = scmp.eq.s32.totalorder %s4004_s29, 0 }
  0x6d   : > { %3877 = dma.done.wait (%p5208_p7), [#allocation6], 4096   ;;  %p5209_p8 = pmov %p5208_p7 }
  0x6e   : > { %v4178_v0 = vld [vmem:[%s4167_s30] sm:$0xff]  ;;  %v4181_v1 = vld [vmem:[%s4167_s30 + $0x8] sm:$0xff]  ;;  %v4190_v4 = vld [vmem:[%s4167_s30 + $0x10] sm:$0xff]  ;;  %vm809_vm0 = vcmask 130048   ;;  %v3907_v34 = vmov 0   ;;  %vm3909_vm1 = vmmov 0  }
  0x6f   : > { %3879 = vsyncadd (%p5209_p8), [#allocation6], 4294963200  ;;  %508 = vadd.xlane.f32.xlu0 %v4178_v0  ;;  %v557_v2 = vmul.f32 %v4178_v0, %v4178_v0  ;;  %v558_v3 = vmul.f32 %v4181_v1, %v4181_v1  ;;  %v4193_v5 = vld [vmem:[%s4167_s30 + $0x18] sm:$0xff]  ;;  %v559_v6 = vmul.f32 %v4190_v4, %v4190_v4  ;;  %v4202_v8 = vld [vmem:[%s4167_s30 + $0x20] sm:$0xff]  ;;  %3362 = vset.pattern.permute.xlu1 %v3907_v34  ;;  %vm1467_vm2 = vcmask 261120   ;;  %s5210_s15 = sld [smem:[#allocation14_spill]] }
  0x70   : > { %v560_v7 = vmul.f32 %v4193_v5, %v4193_v5  ;;  %v4205_v9 = vld [vmem:[%s4167_s30 + $0x28] sm:$0xff]  ;;  %v561_v10 = vmul.f32 %v4202_v8, %v4202_v8  ;;  %v4214_v12 = vld [vmem:[%s4167_s30 + $0x30] sm:$0xff]  ;;  %v4217_v13 = vld [vmem:[%s4167_s30 + $0x38] sm:$0xff]  ;;  %3361 = vset.pattern.permute.xlu0 %v3907_v34  ;;  %s5211_s14 = sld [smem:[#allocation15_spill]]  ;;  %s5073_s16 = scalar_lea.vmem [#allocation8], %s2919_s19 }
  0x71   : > { %573 = vadd.xlane.f32.xlu1 %v557_v2  ;;  %v562_v11 = vmul.f32 %v4205_v9, %v4205_v9  ;;  %v563_v14 = vmul.f32 %v4214_v12, %v4214_v12  ;;  %v564_v15 = vmul.f32 %v4217_v13, %v4217_v13  ;;  %v4226_v16 = vld [vmem:[%s4167_s30 + $0x40] sm:$0xff]  ;;  %v4229_v17 = vld [vmem:[%s4167_s30 + $0x48] sm:$0xff]  ;;  %v4238_v20 = vld [vmem:[%s4167_s30 + $0x50] sm:$0xff]  ;;  %s3060_s19 = sshll.u32 %s4004_s29, 11  ;;  %s5212_s24 = sld [smem:[#allocation16_spill]] }
  0x72   : > { %v565_v18 = vmul.f32 %v4226_v16, %v4226_v16  ;;  %v566_v19 = vmul.f32 %v4229_v17, %v4229_v17  ;;  %v4241_v21 = vld [vmem:[%s4167_s30 + $0x58] sm:$0xff]  ;;  %v567_v22 = vmul.f32 %v4238_v20, %v4238_v20  ;;  %v4250_v24 = vld [vmem:[%s4167_s30 + $0x60] sm:$0xff]  ;;  %v4258_v26 = vld [vmem:[%s4167_s30 + $0x68] sm:$0xff]  ;;  %s2803_s29 = scalar_lea.sflag [#allocation4], %s4161_s22  ;;  %p5213_p0 = scmp.ne.s32.totalorder %s5203_s20, 0 }
  0x73   : > { %510 = vadd.xlane.f32.xlu0 %v4181_v1  ;;  %v568_v23 = vmul.f32 %v4241_v21, %v4241_v21  ;;  %v4255_v25 = vld [vmem:[%s5174_s3] sm:$0xff]   ;;  %v569_v27 = vmul.f32 %v4250_v24, %v4250_v24  ;;  %v570_v28 = vmul.f32 %v4258_v26, %v4258_v26  ;;  %v4271_v29 = vld [vmem:[%s4167_s30 + $0x70] sm:$0xff]  ;;  %v4274_v30 = vld [vmem:[%s4167_s30 + $0x78] sm:$0xff] }
  0x74   : > { %3175 = vmatprep.mubr.msk.bf16.mxu0 %vm809_vm0, %v4255_v25  ;;  %3181 = vmatprep.mubr.msk.bf16.mxu1 %vm809_vm0, %v4255_v25  ;;  %v571_v31 = vmul.f32 %v4271_v29, %v4271_v29  ;;  %v572_v32 = vmul.f32 %v4274_v30, %v4274_v30  ;;  %v776_v33 = vld [vmem:[%s5175_s4 + $0x8] sm:$0xff]  ;;  %v775_v35 = vld [vmem:[%s5175_s4] sm:$0xff]  ;;  %v777_v36 = vld [vmem:[%s5175_s4 + $0x10] sm:$0xff] }
  0x75   : > { %575 = vadd.xlane.f32.xlu1 %v558_v3  ;;  %v778_v37 = vld [vmem:[%s5175_s4 + $0x18] sm:$0xff]  ;;  %v1450_v38 = vld [vmem:[%s5177_s6] sm:$0xff]  ;;  %v1451_v39 = vld [vmem:[%s5177_s6 + $0x8] sm:$0xff] }
  0x77   : > { %512 = vadd.xlane.f32.xlu0 %v4190_v4  ;;  %s5122_s21 = scalar_lea.hbm %s5212_s24, %s3060_s19 }
  0x79   : > { %514 = vadd.xlane.f32.xlu1 %v4193_v5 }
  0x7b   : > { %577 = vadd.xlane.f32.xlu0 %v559_v6 }
  0x7d   : > { %579 = vadd.xlane.f32.xlu1 %v560_v7 }
  0x7f   : > { %516 = vadd.xlane.f32.xlu0 %v4202_v8 }
  0x81   : > { %518 = vadd.xlane.f32.xlu1 %v4205_v9 }
  0x83   : > { %581 = vadd.xlane.f32.xlu0 %v561_v10 }
  0x85   : > { %583 = vadd.xlane.f32.xlu1 %v562_v11 }
  0x87   : > { %520 = vadd.xlane.f32.xlu0 %v4214_v12 }
  0x89   : > { %522 = vadd.xlane.f32.xlu1 %v4217_v13 }
  0x8b   : > { %585 = vadd.xlane.f32.xlu0 %v563_v14 }
  0x8d   : > { %587 = vadd.xlane.f32.xlu1 %v564_v15 }
  0x8f   : > { %524 = vadd.xlane.f32.xlu0 %v4226_v16 }
  0x91   : > { %526 = vadd.xlane.f32.xlu1 %v4229_v17 }
  0x93   : > { %589 = vadd.xlane.f32.xlu0 %v565_v18 }
  0x95   : > { %591 = vadd.xlane.f32.xlu1 %v566_v19 }
  0x97   : > { %528 = vadd.xlane.f32.xlu0 %v4238_v20 }
  0x99   : > { %530 = vadd.xlane.f32.xlu1 %v4241_v21 }
  0x9b   : > { %593 = vadd.xlane.f32.xlu0 %v567_v22 }
  0x9d   : > { %595 = vadd.xlane.f32.xlu1 %v568_v23 }
  0x9f   : > { %532 = vadd.xlane.f32.xlu0 %v4250_v24 }
  0xa1   : > { %534 = vadd.xlane.f32.xlu1 %v4258_v26 }
  0xa3   : > { %597 = vadd.xlane.f32.xlu0 %v569_v27 }
  0xa5   : > { %599 = vadd.xlane.f32.xlu1 %v570_v28 }
  0xa7   : > { %536 = vadd.xlane.f32.xlu0 %v4271_v29 }
  0xa9   : > { %538 = vadd.xlane.f32.xlu1 %v4274_v30 }
  0xab   : > { %601 = vadd.xlane.f32.xlu0 %v571_v31  ;;  %v4312_v31 = vld [vmem:[%s5172_s1] ss:$0 sm:$0xff] }
  0xad   : > { %603 = vadd.xlane.f32.xlu1 %v572_v32 }
  0xbe   : > { %786 = vperm.xlu1 %3362, %v776_v33  }
  0xc1   : > { %781 = vperm.xlu0 %3361, %v775_v35  }
  0xc2   : > { %791 = vperm.xlu1 %3362, %v777_v36  }
  0xc6   : > { %796 = vperm.xlu1 %3362, %v778_v37  }
  0xca   : > { %1454 = vperm.xlu1 %3362, %v1450_v38  }
  0xce   : > { %1459 = vperm.xlu1 %3362, %v1451_v39  }
  0xfc   : > { %v509_v40 = vpop.xlane.xlu0 %508 }
  0xfd   : > { %v541_v41 = vmul.f32 0.0078125, %v509_v40 }
  0xfe   : > { %v574_v42 = vpop.xlane.xlu1 %573 }
  0xff   : > { %v621_v43 = vmul.f32 %v541_v41, %v541_v41  ;;  %v605_v44 = vmul.f32 0.0078125, %v574_v42  ;;  %v685_v11 = vsub.f32 %v4178_v0, %v541_v41 }
 0x100   : > { %v511_v45 = vpop.xlane.xlu0 %510 }
 0x101   : > { %v637_v46 = vsub.f32 %v605_v44, %v621_v43  ;;  %v542_v47 = vmul.f32 0.0078125, %v511_v45  ;;  %v4323_v44 = vld [vmem:[%s5173_s2] ss:$0 sm:$0xff] }
 0x102   : > { %v576_v48 = vpop.xlane.xlu1 %575 }
 0x103   : > { %v653_v49 = vadd.f32 1e-05, %v637_v46  ;;  %v622_v50 = vmul.f32 %v542_v47, %v542_v47  ;;  %v606_v51 = vmul.f32 0.0078125, %v576_v48  ;;  %v686_v0 = vsub.f32 %v4181_v1, %v542_v47 }
 0x104   : > { %v513_v52 = vpop.xlane.xlu0 %512 }
 0x105   : > { %3406 = vrsqrt.f32 %v653_v49  ;;  %v638_v53 = vsub.f32 %v606_v51, %v622_v50  ;;  %v543_v54 = vmul.f32 0.0078125, %v513_v52 }
 0x106   : > { %v515_v55 = vpop.xlane.xlu1 %514 }
 0x107   : > { %v654_v56 = vadd.f32 1e-05, %v638_v53  ;;  %v623_v57 = vmul.f32 %v543_v54, %v543_v54  ;;  %v544_v58 = vmul.f32 0.0078125, %v515_v55  ;;  %v687_v48 = vsub.f32 %v4190_v4, %v543_v54 }
 0x108   : > { %v578_v59 = vpop.xlane.xlu0 %577 }
 0x109   : > { %3408 = vrsqrt.f32 %v654_v56  ;;  %v624_v60 = vmul.f32 %v544_v58, %v544_v58  ;;  %v607_v61 = vmul.f32 0.0078125, %v578_v59  ;;  %v688_v56 = vsub.f32 %v4193_v5, %v544_v58 }
 0x10a   : > { %v580_v62 = vpop.xlane.xlu1 %579 }
 0x10b   : > { %v639_v63 = vsub.f32 %v607_v61, %v623_v57  ;;  %v608_v2 = vmul.f32 0.0078125, %v580_v62 }
 0x10c   : > { %v517_v3 = vpop.xlane.xlu0 %516 }
 0x10d   : > { %v655_v6 = vadd.f32 1e-05, %v639_v63  ;;  %v640_v7 = vsub.f32 %v608_v2, %v624_v60  ;;  %v4302_v10 = vmul.f32 0.0078125, %v517_v3  ;;  %v4339_v2 = vld [vmem:[%s5174_s3 + $0x8] sm:$0xff]  }
 0x10e   : > { %v519_v14 = vpop.xlane.xlu1 %518 }
 0x10f   : > { %v3407_v15 = vpop.eup %3406  ;;  %3410 = vrsqrt.f32 %v655_v6  ;;  %v656_v18 = vadd.f32 1e-05, %v640_v7  ;;  %v625_v19 = vmul.f32 %v4302_v10, %v4302_v10  ;;  %v4307_v22 = vmul.f32 0.0078125, %v519_v14 }
 0x110   : > { %v582_v23 = vpop.xlane.xlu0 %581  ;;  %v701_v27 = vmul.f32 %v3407_v15, %v685_v11 }
 0x111   : > { %3412 = vrsqrt.f32 %v656_v18  ;;  %v609_v28 = vmul.f32 0.0078125, %v582_v23  ;;  %v626_v32 = vmul.f32 %v4307_v22, %v4307_v22 }
 0x112   : > { %v584_v33 = vpop.xlane.xlu1 %583  ;;  %v724_v40 = vmul.f32 %v4312_v31, %v701_v27 }
 0x113   : > { %v3409_v35 = vpop.eup %3408  ;;  %v641_v36 = vsub.f32 %v609_v28, %v625_v19  ;;  %v610_v37 = vmul.f32 0.0078125, %v584_v33  ;;  %v689_v19 = vsub.f32 %v4202_v8, %v4302_v10 }
 0x114   : > { %v521_v38 = vpop.xlane.xlu0 %520  ;;  %v702_v39 = vmul.f32 %v3409_v35, %v686_v0  ;;  %v747_v51 = vadd.f32 %v4323_v44, %v724_v40  ;;  %v690_v35 = vsub.f32 %v4205_v9, %v4307_v22 }
 0x115   : > { %v657_v41 = vadd.f32 1e-05, %v641_v36  ;;  %v642_v42 = vsub.f32 %v610_v37, %v626_v32  ;;  %v4318_v43 = vmul.f32 0.0078125, %v521_v38 }
 0x116   : > { %v523_v1 = vpop.xlane.xlu1 %522  ;;  %v725_v45 = vmul.f32 %v4312_v31, %v702_v39 }
 0x117   : > { %3414 = vrsqrt.f32 %v657_v41  ;;  %v658_v46 = vadd.f32 1e-05, %v642_v42  ;;  %v627_v47 = vmul.f32 %v4318_v43, %v4318_v43  ;;  %v4329_v49 = vmul.f32 0.0078125, %v523_v1 }
 0x118   : > { %v586_v50 = vpop.xlane.xlu0 %585  ;;  %v748_v52 = vadd.f32 %v4323_v44, %v725_v45 }
 0x119   : > { %v3411_v53 = vpop.eup %3410  ;;  %3416 = vrsqrt.f32 %v658_v46  ;;  %v611_v55 = vmul.f32 0.0078125, %v586_v50  ;;  %v628_v57 = vmul.f32 %v4329_v49, %v4329_v49 }
 0x11a   : > { %v588_v59 = vpop.xlane.xlu1 %587  ;;  %v763_v60 = vpack.c.bf16 %v748_v52, %v747_v51  ;;  %v703_v61 = vmul.f32 %v3411_v53, %v687_v48  ;;  %v691_v51 = vsub.f32 %v4214_v12, %v4318_v43 }
 0x11b   : > { %v3413_v62 = vpop.eup %3412  ;;  %v643_v4 = vsub.f32 %v611_v55, %v627_v47  ;;  %v612_v54 = vmul.f32 0.0078125, %v588_v59 }
 0x11c   : > { %v525_v63 = vpop.xlane.xlu0 %524  ;;  %3173 = vmatprep.subr.bf16.mxu0 %v763_v60  ;;  %v704_v3 = vmul.f32 %v3413_v62, %v688_v56  ;;  %v726_v6 = vmul.f32 %v4312_v31, %v703_v61 }
 0x11d   : > { %v659_v5 = vadd.f32 1e-05, %v643_v4  ;;  %v644_v58 = vsub.f32 %v612_v54, %v628_v57  ;;  %v4342_v7 = vmul.f32 0.0078125, %v525_v63  ;;  %3174 = vmatpush3.bf16.msra.mxu0 %v763_v60  ;;  %v692_v60 = vsub.f32 %v4217_v13, %v4329_v49 }
 0x11e   : > { %v527_v11 = vpop.xlane.xlu1 %526  ;;  %v727_v14 = vmul.f32 %v4312_v31, %v704_v3  ;;  %v749_v28 = vadd.f32 %v4323_v44, %v726_v6 }
 0x11f   : > { %3418 = vrsqrt.f32 %v659_v5  ;;  %v660_v15 = vadd.f32 1e-05, %v644_v58  ;;  %v629_v18 = vmul.f32 %v4342_v7, %v4342_v7  ;;  %v4349_v23 = vmul.f32 0.0078125, %v527_v11 }
 0x120   : > { %v590_v27 = vpop.xlane.xlu0 %589  ;;  %3176 = vmatmul.mubr.msk.bf16.vlgmr.msra.gmra.mrb[0].mxu0 %vm809_vm0, %v4339_v2  ;;  %v750_v0 = vadd.f32 %v4323_v44, %v727_v14 }
 0x121   : > { %v3415_v32 = vpop.eup %3414  ;;  %3420 = vrsqrt.f32 %v660_v15  ;;  %v613_v33 = vmul.f32 0.0078125, %v590_v27  ;;  %3187 = vmatprep.mubr.msk.bf16.mxu0 %vm809_vm0, %v4255_v25  ;;  %v630_v8 = vmul.f32 %v4349_v23, %v4349_v23 }
 0x122   : > { %v592_v10 = vpop.xlane.xlu1 %591  ;;  %v764_v36 = vpack.c.bf16 %v750_v0, %v749_v28  ;;  %v705_v37 = vmul.f32 %v3415_v32, %v689_v19  ;;  %v693_v19 = vsub.f32 %v4226_v16, %v4342_v7 }
 0x123   : > { %v3417_v38 = vpop.eup %3416  ;;  %v645_v39 = vsub.f32 %v613_v33, %v629_v18  ;;  %v614_v40 = vmul.f32 0.0078125, %v592_v10 }
 0x124   : > { %v529_v41 = vpop.xlane.xlu0 %528  ;;  %3179 = vmatprep.subr.bf16.mxu1 %v764_v36  ;;  %v706_v42 = vmul.f32 %v3417_v38, %v690_v35  ;;  %v728_v1 = vmul.f32 %v4312_v31, %v705_v37 }
 0x125   : > { %v661_v45 = vadd.f32 1e-05, %v645_v39  ;;  %v646_v46 = vsub.f32 %v614_v40, %v630_v8  ;;  %v4362_v47 = vmul.f32 0.0078125, %v529_v41  ;;  %3180 = vmatpush3.bf16.msra.mxu1 %v764_v36  ;;  %v694_v8 = vsub.f32 %v4229_v17, %v4349_v23 }
 0x126   : > { %v531_v9 = vpop.xlane.xlu1 %530  ;;  %v729_v22 = vmul.f32 %v4312_v31, %v706_v42  ;;  %v751_v55 = vadd.f32 %v4323_v44, %v728_v1 }
 0x127   : > { %3422 = vrsqrt.f32 %v661_v45  ;;  %v662_v48 = vadd.f32 1e-05, %v646_v46  ;;  %v631_v50 = vmul.f32 %v4362_v47, %v4362_v47  ;;  %v4369_v52 = vmul.f32 0.0078125, %v531_v9 }
 0x128   : > { %v594_v53 = vpop.xlane.xlu0 %593  ;;  %3182 = vmatmul.mubr.msk.bf16.vlgmr.msra.gmra.mrb[0].mxu1 %vm809_vm0, %v4339_v2  ;;  %v752_v56 = vadd.f32 %v4323_v44, %v729_v22 }
 0x129   : > { %v3419_v57 = vpop.eup %3418  ;;  %3424 = vrsqrt.f32 %v662_v48  ;;  %v615_v59 = vmul.f32 0.0078125, %v594_v53  ;;  %3193 = vmatprep.mubr.msk.bf16.mxu1 %vm809_vm0, %v4255_v25  ;;  %v632_v12 = vmul.f32 %v4369_v52, %v4369_v52  ;;  %v695_v48 = vsub.f32 %v4238_v20, %v4362_v47 }
 0x12a   : > { %v596_v43 = vpop.xlane.xlu1 %595  ;;  %v765_v61 = vpack.c.bf16 %v752_v56, %v751_v55  ;;  %v707_v62 = vmul.f32 %v3419_v57, %v691_v51 }
 0x12b   : > { %v3421_v4 = vpop.eup %3420  ;;  %v647_v54 = vsub.f32 %v615_v59, %v631_v50  ;;  %v616_v63 = vmul.f32 0.0078125, %v596_v43  ;;  %v696_v59 = vsub.f32 %v4241_v21, %v4369_v52 }
 0x12c   : > { %v533_v3 = vpop.xlane.xlu0 %532  ;;  %3185 = vmatprep.subr.bf16.mxu0 %v765_v61  ;;  %v708_v6 = vmul.f32 %v3421_v4, %v692_v60  ;;  %v730_v5 = vmul.f32 %v4312_v31, %v707_v62 }
 0x12d   : > { %v663_v58 = vadd.f32 1e-05, %v647_v54  ;;  %v648_v11 = vsub.f32 %v616_v63, %v632_v12  ;;  %v4382_v14 = vmul.f32 0.0078125, %v533_v3  ;;  %3186 = vmatpush3.bf16.msra.mxu0 %v765_v61 }
 0x12e   : > { %v535_v13 = vpop.xlane.xlu1 %534  ;;  %v731_v49 = vmul.f32 %v4312_v31, %v708_v6  ;;  %v753_v0 = vadd.f32 %v4323_v44, %v730_v5 }
 0x12f   : > { %3426 = vrsqrt.f32 %v663_v58  ;;  %v664_v15 = vadd.f32 1e-05, %v648_v11  ;;  %v633_v18 = vmul.f32 %v4382_v14, %v4382_v14  ;;  %v4389_v27 = vmul.f32 0.0078125, %v535_v13 }
 0x130   : > { %v598_v28 = vpop.xlane.xlu0 %597  ;;  %3188 = vmatmul.mubr.msk.bf16.vlgmr.msra.gmra.mrb[4].mxu0 %vm809_vm0, %v4339_v2  ;;  %v754_v32 = vadd.f32 %v4323_v44, %v731_v49  ;;  %v697_v21 = vsub.f32 %v4250_v24, %v4382_v14 }
 0x131   : > { %v3423_v33 = vpop.eup %3422  ;;  %3428 = vrsqrt.f32 %v664_v15  ;;  %v617_v35 = vmul.f32 0.0078125, %v598_v28  ;;  %3199 = vmatprep.mubr.msk.bf16.mxu0 %vm809_vm0, %v4255_v25  ;;  %v634_v16 = vmul.f32 %v4389_v27, %v4389_v27  ;;  %v698_v13 = vsub.f32 %v4258_v26, %v4389_v27 }
 0x132   : > { %v600_v7 = vpop.xlane.xlu1 %599  ;;  %v766_v10 = vpack.c.bf16 %v754_v32, %v753_v0  ;;  %v709_v36 = vmul.f32 %v3423_v33, %v693_v19 }
 0x133   : > { %v3425_v37 = vpop.eup %3424  ;;  %v649_v38 = vsub.f32 %v617_v35, %v633_v18  ;;  %v618_v39 = vmul.f32 0.0078125, %v600_v7 }
 0x134   : > { %v537_v40 = vpop.xlane.xlu0 %536  ;;  %3191 = vmatprep.subr.bf16.mxu1 %v766_v10  ;;  %v710_v41 = vmul.f32 %v3425_v37, %v694_v8  ;;  %v732_v42 = vmul.f32 %v4312_v31, %v709_v36 }
 0x135   : > { %v665_v1 = vadd.f32 1e-05, %v649_v38  ;;  %v650_v45 = vsub.f32 %v618_v39, %v634_v16  ;;  %v555_v46 = vmul.f32 0.0078125, %v537_v40  ;;  %3192 = vmatpush3.bf16.msra.mxu1 %v766_v10 }
 0x136   : > { %v539_v9 = vpop.xlane.xlu1 %538  ;;  %v733_v17 = vmul.f32 %v4312_v31, %v710_v41  ;;  %v755_v53 = vadd.f32 %v4323_v44, %v732_v42 }
 0x137   : > { %3430 = vrsqrt.f32 %v665_v1  ;;  %v666_v23 = vadd.f32 1e-05, %v650_v45  ;;  %v635_v22 = vmul.f32 %v555_v46, %v555_v46  ;;  %v556_v50 = vmul.f32 0.0078125, %v539_v9 }
 0x138   : > { %v602_v51 = vpop.xlane.xlu0 %601  ;;  %3194 = vmatmul.mubr.msk.bf16.vlgmr.msra.gmra.mrb[4].mxu1 %vm809_vm0, %v4339_v2  ;;  %v756_v55 = vadd.f32 %v4323_v44, %v733_v17  ;;  %v699_v28 = vsub.f32 %v4271_v29, %v555_v46 }
 0x139   : > { %v3427_v56 = vpop.eup %3426  ;;  %3432 = vrsqrt.f32 %v666_v23  ;;  %v619_v57 = vmul.f32 0.0078125, %v602_v51  ;;  %3205 = vmatprep.mubr.msk.bf16.mxu1 %vm809_vm0, %v4255_v25  ;;  %v636_v60 = vmul.f32 %v556_v50, %v556_v50  ;;  %v700_v27 = vsub.f32 %v4274_v30, %v556_v50 }
 0x13a   : > { %v604_v20 = vpop.xlane.xlu1 %603  ;;  %v767_v47 = vpack.c.bf16 %v756_v55, %v755_v53  ;;  %v711_v12 = vmul.f32 %v3427_v56, %v695_v48  ;;  %v3908_v30 = vmov 0.0  }
 0x13b   : > { %v3429_v43 = vpop.eup %3428  ;;  %v651_v61 = vsub.f32 %v619_v57, %v635_v22  ;;  %v620_v62 = vmul.f32 0.0078125, %v604_v20 }
 0x13c   : > { %3197 = vmatprep.subr.bf16.mxu0 %v767_v47  ;;  %v712_v4 = vmul.f32 %v3429_v43, %v696_v59  ;;  %v734_v54 = vmul.f32 %v4312_v31, %v711_v12 }
 0x13d   : > { %v667_v63 = vadd.f32 1e-05, %v651_v61  ;;  %v652_v3 = vsub.f32 %v620_v62, %v636_v60  ;;  %3198 = vmatpush3.bf16.msra.mxu0 %v767_v47 }
 0x13e   : > { %v735_v6 = vmul.f32 %v4312_v31, %v712_v4  ;;  %v757_v52 = vadd.f32 %v4323_v44, %v734_v54 }
 0x13f   : > { %3434 = vrsqrt.f32 %v667_v63  ;;  %v668_v5 = vadd.f32 1e-05, %v652_v3 }
 0x140   : > { %3200 = vmatmul.mubr.msk.bf16.vlgmr.msra.gmra.mrb[8].mxu0 %vm809_vm0, %v4339_v2  ;;  %v758_v58 = vadd.f32 %v4323_v44, %v735_v6  ;;  %v4453_v37 = vpop.permute.xlu0 %781 }
 0x141   : > { %v3431_v11 = vpop.eup %3430  ;;  %3436 = vrsqrt.f32 %v668_v5  ;;  %3211 = vmatprep.mubr.msk.bf16.mxu0 %vm809_vm0, %v4255_v25 }
 0x142   : > { %v768_v49 = vpack.c.bf16 %v758_v58, %v757_v52  ;;  %v713_v15 = vmul.f32 %v3431_v11, %v697_v21 }
 0x143   : > { %v3433_v18 = vpop.eup %3432 }
 0x144   : > { %3203 = vmatprep.subr.bf16.mxu1 %v768_v49  ;;  %v714_v24 = vmul.f32 %v3433_v18, %v698_v13  ;;  %v736_v14 = vmul.f32 %v4312_v31, %v713_v15 }
 0x145   : > { %3204 = vmatpush3.bf16.msra.mxu1 %v768_v49 }
 0x146   : > { %v737_v19 = vmul.f32 %v4312_v31, %v714_v24  ;;  %v759_v0 = vadd.f32 %v4323_v44, %v736_v14 }
 0x148   : > { %3206 = vmatmul.mubr.msk.bf16.vlgmr.msra.gmra.mrb[8].mxu1 %vm809_vm0, %v4339_v2  ;;  %v760_v32 = vadd.f32 %v4323_v44, %v737_v19 }
 0x149   : > { %v3435_v26 = vpop.eup %3434  ;;  %3217 = vmatprep.mubr.msk.bf16.mxu1 %vm809_vm0, %v4255_v25 }
 0x14a   : > { %v769_v33 = vpack.c.bf16 %v760_v32, %v759_v0  ;;  %v715_v35 = vmul.f32 %v3435_v26, %v699_v28 }
 0x14b   : > { %v3437_v8 = vpop.eup %3436 }
 0x14c   : > { %3209 = vmatprep.subr.bf16.mxu0 %v769_v33  ;;  %v716_v16 = vmul.f32 %v3437_v8, %v700_v27  ;;  %v738_v29 = vmul.f32 %v4312_v31, %v715_v35 }
 0x14d   : > { %3210 = vmatpush3.bf16.msra.mxu0 %v769_v33 }
 0x14e   : > { %v739_v7 = vmul.f32 %v4312_v31, %v716_v16  ;;  %v761_v10 = vadd.f32 %v4323_v44, %v738_v29  ;;  %3221 = vmatprep.subr.bf16.mxu0 %v3908_v30  ;;  %v4449_v31 = vpop.permute.xlu1 %786 }
 0x150   : > { %3212 = vmatmul.mubr.msk.bf16.vlgmr.msra.gmra.mrb[12].mxu0 %vm809_vm0, %v4339_v2  ;;  %v762_v36 = vadd.f32 %v4323_v44, %v739_v7 }
 0x151   : > { %3225 = vmatprep.mubr.msk.bf16.mxu0 %vm3909_vm1, %v3908_v30 }
 0x152   : > { %v770_v25 = vpack.c.bf16 %v762_v36, %v761_v10  ;;  %v4451_v44 = vpop.permute.xlu1 %791 }
 0x154   : > { %3215 = vmatprep.subr.bf16.mxu1 %v770_v25 }
 0x155   : > { %3216 = vmatpush3.bf16.msra.mxu1 %v770_v25 }
 0x156   : > { %3229 = vmatprep.subr.bf16.mxu1 %v3908_v30  ;;  %v4458_v40 = vpop.permute.xlu1 %796 }
 0x158   : > { %3218 = vmatmul.mubr.msk.bf16.vlgmr.msra.gmra.mrb[12].mxu1 %vm809_vm0, %v4339_v2 }
 0x159   : > { %3233 = vmatprep.mubr.msk.bf16.mxu1 %vm3909_vm1, %v3908_v30 }
 0x1f3   : > { %v3177_v38 = vpop.f32.mrb[0].mxu0 }
 0x1f4   : > { %v4456_v2 = vadd.f32 %v3177_v38, %v4451_v44  ;;  %v850_v39 = vpop.f32.mrb[1].mxu0 }
 0x1f5   : > { %v4461_v41 = vadd.f32 %v850_v39, %v4453_v37  ;;  %v3178_v42 = vpop.f32.mrb[2].mxu0 }
 0x1f6   : > { %v2945_v1 = vmul.f32 -1.442695, %v4456_v2  ;;  %v4465_v45 = vadd.f32 %v3178_v42, %v4458_v40  ;;  %v853_v46 = vpop.f32.mrb[3].mxu0 }
 0x1f7   : > { %v2943_v9 = vmul.f32 -1.442695, %v4461_v41  ;;  %v4469_v17 = vadd.f32 %v853_v46, %v4449_v31 }
 0x1f8   : > { %3438 = vpow2.f32 %v2945_v1  ;;  %v2946_v23 = vmul.f32 -1.442695, %v4465_v45 }
 0x1f9   : > { %3440 = vpow2.f32 %v2943_v9  ;;  %v2944_v22 = vmul.f32 -1.442695, %v4469_v17 }
 0x1fa   : > { %3442 = vpow2.f32 %v2946_v23 }
 0x1fb   : > { %3444 = vpow2.f32 %v2944_v22  ;;  %v3183_v48 = vpop.f32.mrb[0].mxu1 }
 0x1fc   : > { %v4474_v50 = vadd.f32 %v3183_v48, %v4451_v44  ;;  %v899_v51 = vpop.f32.mrb[1].mxu1 }
 0x1fd   : > { %v4477_v53 = vadd.f32 %v899_v51, %v4453_v37  ;;  %v3184_v55 = vpop.f32.mrb[2].mxu1 }
 0x1fe   : > { %v2949_v56 = vmul.f32 -1.442695, %v4474_v50  ;;  %v4481_v57 = vadd.f32 %v3184_v55, %v4458_v40  ;;  %v902_v59 = vpop.f32.mrb[3].mxu1 }
 0x1ff   : > { %v2947_v60 = vmul.f32 -1.442695, %v4477_v53  ;;  %v4485_v20 = vadd.f32 %v902_v59, %v4449_v31 }
 0x200   : > { %3446 = vpow2.f32 %v2949_v56  ;;  %v2950_v47 = vmul.f32 -1.442695, %v4481_v57 }
 0x201   : > { %3448 = vpow2.f32 %v2947_v60  ;;  %v2948_v12 = vmul.f32 -1.442695, %v4485_v20 }
 0x202   : > { %v3439_v43 = vpop.eup %3438  ;;  %3450 = vpow2.f32 %v2950_v47 }
 0x203   : > { %v3441_v61 = vpop.eup %3440  ;;  %v1306_v62 = vadd.f32 1.0, %v3439_v43  ;;  %3452 = vpow2.f32 %v2948_v12  ;;  %v3189_v4 = vpop.f32.mrb[4].mxu0 }
 0x204   : > { %v3443_v54 = vpop.eup %3442  ;;  %v1304_v63 = vadd.f32 1.0, %v3441_v61  ;;  %v4490_v3 = vadd.f32 %v3189_v4, %v4451_v44  ;;  %v948_v6 = vpop.f32.mrb[5].mxu0 }
 0x205   : > { %v3445_v5 = vpop.eup %3444  ;;  %3454 = vrcp.f32 %v1306_v62  ;;  %v1307_v21 = vadd.f32 1.0, %v3443_v54  ;;  %v4493_v52 = vadd.f32 %v948_v6, %v4453_v37  ;;  %v3190_v58 = vpop.f32.mrb[6].mxu0 }
 0x206   : > { %3456 = vrcp.f32 %v1304_v63  ;;  %v1305_v11 = vadd.f32 1.0, %v3445_v5  ;;  %v2953_v13 = vmul.f32 -1.442695, %v4490_v3  ;;  %v4497_v49 = vadd.f32 %v3190_v58, %v4458_v40  ;;  %v951_v15 = vpop.f32.mrb[7].mxu0 }
 0x207   : > { %3458 = vrcp.f32 %v1307_v21  ;;  %v2951_v18 = vmul.f32 -1.442695, %v4493_v52  ;;  %v4501_v24 = vadd.f32 %v951_v15, %v4449_v31 }
 0x208   : > { %3460 = vrcp.f32 %v1305_v11  ;;  %v2954_v14 = vmul.f32 -1.442695, %v4497_v49 }
 0x209   : > { %3462 = vpow2.f32 %v2953_v13  ;;  %v2952_v19 = vmul.f32 -1.442695, %v4501_v24 }
 0x20a   : > { %v3447_v28 = vpop.eup %3446  ;;  %3464 = vpow2.f32 %v2951_v18 }
 0x20b   : > { %v3449_v0 = vpop.eup %3448  ;;  %v1310_v32 = vadd.f32 1.0, %v3447_v28  ;;  %3466 = vpow2.f32 %v2954_v14  ;;  %v3195_v26 = vpop.f32.mrb[4].mxu1 }
 0x20c   : > { %v3451_v27 = vpop.eup %3450  ;;  %v1308_v33 = vadd.f32 1.0, %v3449_v0  ;;  %3468 = vpow2.f32 %v2952_v19  ;;  %v4506_v35 = vadd.f32 %v3195_v26, %v4451_v44  ;;  %v997_v8 = vpop.f32.mrb[5].mxu1 }
 0x20d   : > { %v3453_v16 = vpop.eup %3452  ;;  %3470 = vrcp.f32 %v1310_v32  ;;  %v1311_v29 = vadd.f32 1.0, %v3451_v27  ;;  %v4509_v7 = vadd.f32 %v997_v8, %v4453_v37  ;;  %v3196_v10 = vpop.f32.mrb[6].mxu1  ;;  %v4547_v8 = vld [vmem:[%s5176_s5] sm:$0xff]  }
 0x20e   : > { %3472 = vrcp.f32 %v1308_v33  ;;  %v1309_v36 = vadd.f32 1.0, %v3453_v16  ;;  %v2957_v25 = vmul.f32 -1.442695, %v4506_v35  ;;  %v4513_v38 = vadd.f32 %v3196_v10, %v4458_v40  ;;  %v1000_v39 = vpop.f32.mrb[7].mxu1 }
 0x20f   : > { %v3455_v42 = vpop.eup %3454  ;;  %3474 = vrcp.f32 %v1311_v29  ;;  %v2955_v1 = vmul.f32 -1.442695, %v4509_v7  ;;  %v4517_v46 = vadd.f32 %v1000_v39, %v4449_v31 }
 0x210   : > { %v3457_v9 = vpop.eup %3456  ;;  %3476 = vrcp.f32 %v1309_v36  ;;  %v2958_v23 = vmul.f32 -1.442695, %v4513_v38  ;;  %v1402_v55 = vmul.f32 %v3455_v42, %v4456_v2 }
 0x211   : > { %v3459_v22 = vpop.eup %3458  ;;  %3478 = vpow2.f32 %v2957_v25  ;;  %v2956_v48 = vmul.f32 -1.442695, %v4517_v46  ;;  %v1400_v60 = vmul.f32 %v3457_v9, %v4461_v41 }
 0x212   : > { %v3461_v51 = vpop.eup %3460  ;;  %v1403_v56 = vmul.f32 %v3459_v22, %v4465_v45  ;;  %3480 = vpow2.f32 %v2955_v1 }
 0x213   : > { %v3463_v59 = vpop.eup %3462  ;;  %v1401_v47 = vmul.f32 %v3461_v51, %v4469_v17  ;;  %3482 = vpow2.f32 %v2958_v23  ;;  %v3201_v12 = vpop.f32.mrb[8].mxu0 }
 0x214   : > { %v3465_v43 = vpop.eup %3464  ;;  %v1435_v61 = vpack.c.bf16 %v1403_v56, %v1402_v55  ;;  %v1314_v62 = vadd.f32 1.0, %v3463_v59  ;;  %3484 = vpow2.f32 %v2956_v48  ;;  %v4526_v4 = vadd.f32 %v3201_v12, %v4451_v44  ;;  %v1046_v54 = vpop.f32.mrb[9].mxu0 }
 0x215   : > { %v3467_v63 = vpop.eup %3466  ;;  %v1434_v2 = vpack.c.bf16 %v1401_v47, %v1400_v60  ;;  %v1312_v6 = vadd.f32 1.0, %v3465_v43  ;;  %v4529_v45 = vadd.f32 %v1046_v54, %v4453_v37  ;;  %v3202_v5 = vpop.f32.mrb[10].mxu0 }
 0x216   : > { %v3469_v41 = vpop.eup %3468  ;;  %3486 = vrcp.f32 %v1314_v62  ;;  %v1315_v17 = vadd.f32 1.0, %v3467_v63  ;;  %v2961_v21 = vmul.f32 -1.442695, %v4526_v4  ;;  %v4533_v58 = vadd.f32 %v3202_v5, %v4458_v40  ;;  %v1049_v11 = vpop.f32.mrb[11].mxu0 }
 0x217   : > { %v3471_v13 = vpop.eup %3470  ;;  %3488 = vrcp.f32 %v1312_v6  ;;  %v1313_v15 = vadd.f32 1.0, %v3469_v41  ;;  %v2959_v18 = vmul.f32 -1.442695, %v4529_v45  ;;  %v4537_v14 = vadd.f32 %v1049_v11, %v4449_v31  ;;  %3222 = vmatpush3.bf16.msra.mxu0 %v1434_v2 }
 0x218   : > { %v3473_v19 = vpop.eup %3472  ;;  %3490 = vrcp.f32 %v1315_v17  ;;  %v2962_v28 = vmul.f32 -1.442695, %v4533_v58  ;;  %3223 = vmatprep.subr.bf16.mxu0 %v3908_v30  ;;  %v1406_v27 = vmul.f32 %v3471_v13, %v4474_v50 }
 0x219   : > { %v3475_v0 = vpop.eup %3474  ;;  %3492 = vrcp.f32 %v1313_v15  ;;  %v2960_v32 = vmul.f32 -1.442695, %v4537_v14  ;;  %v1404_v29 = vmul.f32 %v3473_v19, %v4477_v53 }
 0x21a   : > { %v3477_v26 = vpop.eup %3476  ;;  %v1407_v33 = vmul.f32 %v3475_v0, %v4481_v57  ;;  %3494 = vpow2.f32 %v2961_v21 }
 0x21b   : > { %v3479_v16 = vpop.eup %3478  ;;  %v1405_v10 = vmul.f32 %v3477_v26, %v4485_v20  ;;  %3496 = vpow2.f32 %v2959_v18  ;;  %v3207_v36 = vpop.f32.mrb[8].mxu1  ;;  %3224 = vmatpush3.bf16.msra.mxu0 %v1435_v61 }
 0x21c   : > { %v3481_v25 = vpop.eup %3480  ;;  %v1437_v39 = vpack.c.bf16 %v1407_v33, %v1406_v27  ;;  %v1318_v50 = vadd.f32 1.0, %v3479_v16  ;;  %3498 = vpow2.f32 %v2962_v28  ;;  %v4552_v57 = vadd.f32 %v3207_v36, %v4451_v44  ;;  %v1095_v42 = vpop.f32.mrb[9].mxu1  ;;  %3237 = vmatprep.subr.bf16.mxu0 %v3908_v30 }
 0x21d   : > { %v3483_v1 = vpop.eup %3482  ;;  %v1436_v9 = vpack.c.bf16 %v1405_v10, %v1404_v29  ;;  %v1316_v23 = vadd.f32 1.0, %v3481_v25  ;;  %3500 = vpow2.f32 %v2960_v32  ;;  %v4556_v53 = vadd.f32 %v1095_v42, %v4453_v37  ;;  %v3208_v20 = vpop.f32.mrb[10].mxu1 }
 0x21e   : > { %v3485_v22 = vpop.eup %3484  ;;  %3502 = vrcp.f32 %v1318_v50  ;;  %v1319_v48 = vadd.f32 1.0, %v3483_v1  ;;  %v2965_v51 = vmul.f32 -1.442695, %v4552_v57  ;;  %v4560_v55 = vadd.f32 %v3208_v20, %v4458_v40  ;;  %v1098_v56 = vpop.f32.mrb[11].mxu1  ;;  %3226 = vmatmul.mubr.msk.bf16.vlgmr.msra.gmra.mrb[16].mxu0 %vm1467_vm2, %v4547_v8 }
 0x21f   : > { %3504 = vrcp.f32 %v1316_v23  ;;  %v1317_v59 = vadd.f32 1.0, %v3485_v22  ;;  %v2963_v60 = vmul.f32 -1.442695, %v4556_v53  ;;  %v4566_v47 = vadd.f32 %v1098_v56, %v4449_v31  ;;  %3230 = vmatpush3.bf16.msra.mxu1 %v1436_v9  ;;  %3241 = vmatprep.mubr.msk.bf16.mxu0 %vm3909_vm1, %v3908_v30 }
 0x220   : > { %v3487_v12 = vpop.eup %3486  ;;  %3506 = vrcp.f32 %v1319_v48  ;;  %v2966_v43 = vmul.f32 -1.442695, %v4560_v55  ;;  %3231 = vmatprep.subr.bf16.mxu1 %v3908_v30 }
 0x221   : > { %v3489_v61 = vpop.eup %3488  ;;  %3508 = vrcp.f32 %v1317_v59  ;;  %v2964_v62 = vmul.f32 -1.442695, %v4566_v47  ;;  %v1410_v2 = vmul.f32 %v3487_v12, %v4490_v3 }
 0x222   : > { %v3491_v54 = vpop.eup %3490  ;;  %3510 = vpow2.f32 %v2965_v51  ;;  %v1408_v17 = vmul.f32 %v3489_v61, %v4493_v52 }
 0x223   : > { %v3493_v63 = vpop.eup %3492  ;;  %v1411_v6 = vmul.f32 %v3491_v54, %v4497_v49  ;;  %3512 = vpow2.f32 %v2963_v60  ;;  %v3213_v5 = vpop.f32.mrb[12].mxu0  ;;  %3232 = vmatpush3.bf16.msra.mxu1 %v1437_v39 }
 0x224   : > { %v3495_v41 = vpop.eup %3494  ;;  %v1409_v21 = vmul.f32 %v3493_v63, %v4501_v24  ;;  %3514 = vpow2.f32 %v2966_v43  ;;  %v4578_v11 = vadd.f32 %v3213_v5, %v4451_v44  ;;  %v1144_v13 = vpop.f32.mrb[13].mxu0  ;;  %3245 = vmatprep.subr.bf16.mxu1 %v3908_v30 }
 0x225   : > { %v3497_v15 = vpop.eup %3496  ;;  %v1439_v18 = vpack.c.bf16 %v1411_v6, %v1410_v2  ;;  %v1322_v3 = vadd.f32 1.0, %v3495_v41  ;;  %3516 = vpow2.f32 %v2964_v62  ;;  %v4582_v49 = vadd.f32 %v1144_v13, %v4453_v37  ;;  %v3214_v19 = vpop.f32.mrb[14].mxu0 }
 0x226   : > { %v3499_v28 = vpop.eup %3498  ;;  %v1438_v0 = vpack.c.bf16 %v1409_v21, %v1408_v17  ;;  %v1320_v52 = vadd.f32 1.0, %v3497_v15  ;;  %v4585_v24 = vadd.f32 %v3214_v19, %v4458_v40  ;;  %v1147_v32 = vpop.f32.mrb[15].mxu0  ;;  %3234 = vmatmul.mubr.msk.bf16.vlgmr.msra.gmra.mrb[16].mxu1 %vm1467_vm2, %v4547_v8  ;;  %v2969_v33 = vmul.f32 -1.442695, %v4578_v11 }
 0x227   : > { %v3501_v26 = vpop.eup %3500  ;;  %3518 = vrcp.f32 %v1322_v3  ;;  %v1323_v27 = vadd.f32 1.0, %v3499_v28  ;;  %v4591_v16 = vadd.f32 %v1147_v32, %v4449_v31  ;;  %3249 = vmatprep.mubr.msk.bf16.mxu1 %vm3909_vm1, %v3908_v30  ;;  %v2967_v36 = vmul.f32 -1.442695, %v4582_v49 }
 0x228   : > { %v3503_v29 = vpop.eup %3502  ;;  %3520 = vrcp.f32 %v1320_v52  ;;  %v1321_v10 = vadd.f32 1.0, %v3501_v26  ;;  %3238 = vmatpush3.bf16.msra.mxu0 %v1438_v0  ;;  %v2970_v39 = vmul.f32 -1.442695, %v4585_v24 }
 0x229   : > { %v3505_v25 = vpop.eup %3504  ;;  %3522 = vrcp.f32 %v1323_v27  ;;  %3239 = vmatprep.subr.bf16.mxu0 %v3908_v30  ;;  %v2968_v42 = vmul.f32 -1.442695, %v4591_v16  ;;  %v1414_v9 = vmul.f32 %v3503_v29, %v4506_v35 }
 0x22a   : > { %v3507_v50 = vpop.eup %3506  ;;  %3524 = vrcp.f32 %v1321_v10  ;;  %v1412_v48 = vmul.f32 %v3505_v25, %v4509_v7 }
 0x22b   : > { %v3509_v1 = vpop.eup %3508  ;;  %v1415_v23 = vmul.f32 %v3507_v50, %v4513_v38  ;;  %3526 = vpow2.f32 %v2969_v33  ;;  %v3219_v20 = vpop.f32.mrb[12].mxu1 }
 0x22c   : > { %v3511_v22 = vpop.eup %3510  ;;  %v1413_v51 = vmul.f32 %v3509_v1, %v4517_v46  ;;  %3528 = vpow2.f32 %v2967_v36  ;;  %v4604_v56 = vadd.f32 %v3219_v20, %v4451_v44  ;;  %3240 = vmatpush3.bf16.msra.mxu0 %v1439_v18  ;;  %v1193_v59 = vpop.f32.mrb[13].mxu1 }
 0x22d   : > { %v3513_v60 = vpop.eup %3512  ;;  %v1441_v12 = vpack.c.bf16 %v1415_v23, %v1414_v9  ;;  %v1326_v43 = vadd.f32 1.0, %v3511_v22  ;;  %3530 = vpow2.f32 %v2970_v39  ;;  %v4607_v35 = vadd.f32 %v1193_v59, %v4453_v37  ;;  %v3220_v38 = vpop.f32.mrb[14].mxu1  ;;  %3253 = vmatprep.subr.bf16.mxu0 %v3908_v30 }
 0x22e   : > { %v3515_v61 = vpop.eup %3514  ;;  %v1440_v7 = vpack.c.bf16 %v1413_v51, %v1412_v48  ;;  %v1324_v62 = vadd.f32 1.0, %v3513_v60  ;;  %3532 = vpow2.f32 %v2968_v42  ;;  %v1196_v46 = vpop.f32.mrb[15].mxu1  ;;  %v2973_v63 = vmul.f32 -1.442695, %v4604_v56 }
 0x22f   : > { %v3517_v54 = vpop.eup %3516  ;;  %3534 = vrcp.f32 %v1326_v43  ;;  %v1327_v44 = vadd.f32 1.0, %v3515_v61  ;;  %v4612_v2 = vadd.f32 %v3220_v38, %v4458_v40  ;;  %3242 = vmatmul.mubr.msk.bf16.vlgmr.msra.gmra.mrb[20].mxu0 %vm1467_vm2, %v4547_v8  ;;  %v2971_v6 = vmul.f32 -1.442695, %v4607_v35 }
 0x230   : > { %3536 = vrcp.f32 %v1324_v62  ;;  %v1325_v37 = vadd.f32 1.0, %v3517_v54  ;;  %v4618_v5 = vadd.f32 %v1196_v46, %v4449_v31  ;;  %3246 = vmatpush3.bf16.msra.mxu1 %v1440_v7  ;;  %3257 = vmatprep.mubr.msk.bf16.mxu0 %vm3909_vm1, %v3908_v30 }
 0x231   : > { %v3519_v41 = vpop.eup %3518  ;;  %3538 = vrcp.f32 %v1327_v44  ;;  %v2974_v17 = vmul.f32 -1.442695, %v4612_v2  ;;  %3247 = vmatprep.subr.bf16.mxu1 %v3908_v30 }
 0x232   : > { %v3521_v40 = vpop.eup %3520  ;;  %3540 = vrcp.f32 %v1325_v37  ;;  %v2972_v21 = vmul.f32 -1.442695, %v4618_v5  ;;  %v1418_v31 = vmul.f32 %v3519_v41, %v4526_v4 }
 0x233   : > { %v3523_v13 = vpop.eup %3522  ;;  %3542 = vpow2.f32 %v2973_v63  ;;  %v1416_v19 = vmul.f32 %v3521_v40, %v4529_v45 }
 0x234   : > { %v3525_v15 = vpop.eup %3524  ;;  %v1419_v18 = vmul.f32 %v3523_v13, %v4533_v58  ;;  %3544 = vpow2.f32 %v2971_v6  ;;  %3248 = vmatpush3.bf16.msra.mxu1 %v1441_v12 }
 0x235   : > { %v3527_v3 = vpop.eup %3526  ;;  %v1417_v28 = vmul.f32 %v3525_v15, %v4537_v14  ;;  %3546 = vpow2.f32 %v2974_v17  ;;  %3261 = vmatprep.subr.bf16.mxu1 %v3908_v30 }
 0x236   : > { %v3529_v0 = vpop.eup %3528  ;;  %v1443_v52 = vpack.c.bf16 %v1419_v18, %v1418_v31  ;;  %v1330_v32 = vadd.f32 1.0, %v3527_v3  ;;  %3548 = vpow2.f32 %v2972_v21  ;;  %v3726_v21 = vld [vmem:[%s4167_s30] sm:$0xff]  ;;  %v3727_v31 = vld [vmem:[%s4167_s30 + $0x8] sm:$0xff] }
 0x237   : > { %v3531_v26 = vpop.eup %3530  ;;  %v1442_v27 = vpack.c.bf16 %v1417_v28, %v1416_v19  ;;  %v1328_v33 = vadd.f32 1.0, %v3529_v0  ;;  %3250 = vmatmul.mubr.msk.bf16.vlgmr.msra.gmra.mrb[20].mxu1 %vm1467_vm2, %v4547_v8 }
 0x238   : > { %v3533_v4 = vpop.eup %3532  ;;  %3550 = vrcp.f32 %v1330_v32  ;;  %v1331_v58 = vadd.f32 1.0, %v3531_v26  ;;  %3265 = vmatprep.mubr.msk.bf16.mxu1 %vm3909_vm1, %v3908_v30 }
 0x239   : > { %v3535_v45 = vpop.eup %3534  ;;  %3552 = vrcp.f32 %v1328_v33  ;;  %v1329_v14 = vadd.f32 1.0, %v3533_v4  ;;  %3254 = vmatpush3.bf16.msra.mxu0 %v1442_v27  ;;  %v3729_v4 = vld [vmem:[%s4167_s30 + $0x18] sm:$0xff] }
 0x23a   : > { %v3537_v29 = vpop.eup %3536  ;;  %3554 = vrcp.f32 %v1331_v58  ;;  %3255 = vmatprep.subr.bf16.mxu0 %v3908_v30  ;;  %v1422_v25 = vmul.f32 %v3535_v45, %v4552_v57 }
 0x23b   : > { %v3539_v10 = vpop.eup %3538  ;;  %3556 = vrcp.f32 %v1329_v14  ;;  %v1420_v42 = vmul.f32 %v3537_v29, %v4556_v53 }
 0x23c   : > { %v3541_v36 = vpop.eup %3540  ;;  %v1423_v39 = vmul.f32 %v3539_v10, %v4560_v55 }
 0x23d   : > { %v3543_v50 = vpop.eup %3542  ;;  %v1421_v1 = vmul.f32 %v3541_v36, %v4566_v47  ;;  %3256 = vmatpush3.bf16.msra.mxu0 %v1443_v52  ;;  %v3728_v52 = vld [vmem:[%s4167_s30 + $0x10] sm:$0xff] }
 0x23e   : > { %v3545_v9 = vpop.eup %3544  ;;  %v1445_v23 = vpack.c.bf16 %v1423_v39, %v1422_v25  ;;  %v1334_v20 = vadd.f32 1.0, %v3543_v50  ;;  %3269 = vmatprep.subr.bf16.mxu0 %v3908_v30  ;;  %v3730_v39 = vld [vmem:[%s4167_s30 + $0x20] sm:$0xff] }
 0x23f   : > { %v3547_v22 = vpop.eup %3546  ;;  %v1444_v48 = vpack.c.bf16 %v1421_v1, %v1420_v42  ;;  %v1332_v51 = vadd.f32 1.0, %v3545_v9  ;;  %v3366_v9 = vld [vmem:[#allocation5] ss:$8 sps:$4 sm:$0xff]  }
 0x240   : > { %v3549_v59 = vpop.eup %3548  ;;  %3558 = vrcp.f32 %v1334_v20  ;;  %v1335_v60 = vadd.f32 1.0, %v3547_v22  ;;  %3258 = vmatmul.mubr.msk.bf16.vlgmr.msra.gmra.mrb[24].mxu0 %vm1467_vm2, %v4547_v8  ;;  %v3731_v20 = vld [vmem:[%s4167_s30 + $0x28] sm:$0xff] }
 0x241   : > { %3560 = vrcp.f32 %v1332_v51  ;;  %v1333_v57 = vadd.f32 1.0, %v3549_v59  ;;  %3262 = vmatpush3.bf16.msra.mxu1 %v1444_v48  ;;  %3273 = vmatprep.mubr.msk.bf16.mxu0 %vm3909_vm1, %v3908_v30  ;;  %v3371_v59 = vld [vmem:[#allocation5 + $0x14] ss:$8 sps:$4 sm:$0xff]  }
 0x242   : > { %v3551_v53 = vpop.eup %3550  ;;  %3562 = vrcp.f32 %v1335_v60  ;;  %3263 = vmatprep.subr.bf16.mxu1 %v3908_v30 }
 0x243   : > { %v3553_v55 = vpop.eup %3552  ;;  %3564 = vrcp.f32 %v1333_v57  ;;  %v1426_v43 = vmul.f32 %v3551_v53, %v4578_v11  ;;  %v3369_v53 = vld [vmem:[#allocation5 + $0x10] ss:$8 sps:$4 sm:$0xff]  }
 0x244   : > { %v3555_v47 = vpop.eup %3554  ;;  %v1424_v61 = vmul.f32 %v3553_v55, %v4582_v49 }
 0x245   : > { %v3557_v12 = vpop.eup %3556  ;;  %v1427_v38 = vmul.f32 %v3555_v47, %v4585_v24  ;;  %3264 = vmatpush3.bf16.msra.mxu1 %v1445_v23  ;;  %v3368_v23 = vld [vmem:[#allocation5 + $0x4] ss:$8 sps:$4 sm:$0xff]  }
 0x246   : > { %v1425_v7 = vmul.f32 %v3557_v12, %v4591_v16  ;;  %3277 = vmatprep.subr.bf16.mxu1 %v3908_v30  ;;  %v3732_v12 = vld [vmem:[%s4167_s30 + $0x30] sm:$0xff] }
 0x247   : > { %v1447_v62 = vpack.c.bf16 %v1427_v38, %v1426_v43 }
 0x248   : > { %v1446_v46 = vpack.c.bf16 %v1425_v7, %v1424_v61  ;;  %3266 = vmatmul.mubr.msk.bf16.vlgmr.msra.gmra.mrb[24].mxu1 %vm1467_vm2, %v4547_v8  ;;  %v3374_v7 = vld [vmem:[#allocation5 + $0x24] ss:$8 sps:$4 sm:$0xff]  }
 0x249   : > { %3281 = vmatprep.mubr.msk.bf16.mxu1 %vm3909_vm1, %v3908_v30 }
 0x24a   : > { %v3559_v54 = vpop.eup %3558  ;;  %3270 = vmatpush3.bf16.msra.mxu0 %v1446_v46  ;;  %v3733_v46 = vld [vmem:[%s4167_s30 + $0x38] sm:$0xff] }
 0x24b   : > { %v3561_v11 = vpop.eup %3560  ;;  %3271 = vmatprep.subr.bf16.mxu0 %v3908_v30  ;;  %v1430_v49 = vmul.f32 %v3559_v54, %v4604_v56  ;;  %v4665_v56 = vpop.permute.xlu1 %1454 }
 0x24c   : > { %v3563_v24 = vpop.eup %3562  ;;  %v1428_v63 = vmul.f32 %v3561_v11, %v4607_v35 }
 0x24d   : > { %v3565_v44 = vpop.eup %3564  ;;  %v1431_v16 = vmul.f32 %v3563_v24, %v4612_v2  ;;  %v3377_v24 = vld [vmem:[#allocation5 + $0x34] ss:$8 sps:$4 sm:$0xff]  }
 0x24e   : > { %v1429_v37 = vmul.f32 %v3565_v44, %v4618_v5  ;;  %3272 = vmatpush3.bf16.msra.mxu0 %v1447_v62  ;;  %v3372_v62 = vld [vmem:[#allocation5 + $0x20] ss:$8 sps:$4 sm:$0xff]  }
 0x24f   : > { %v1449_v6 = vpack.c.bf16 %v1431_v16, %v1430_v49  ;;  %v4668_v17 = vpop.permute.xlu1 %1459  ;;  %2185 = vmatprep.subr.bf16.mxu0 %v3368_v23  ;;  %v3375_v49 = vld [vmem:[#allocation5 + $0x30] ss:$8 sps:$4 sm:$0xff]  }
 0x250   : > { %v1448_v41 = vpack.c.bf16 %v1429_v37, %v1428_v63 }
 0x251   : > { %3274 = vmatmul.mubr.msk.bf16.vlgmr.msra.gmra.mrb[28].mxu0 %vm1467_vm2, %v4547_v8 }
 0x252   : > { %3278 = vmatpush3.bf16.msra.mxu1 %v1448_v41  ;;  %2217 = vmatprep.mubr.bf16.mxu0 %v3907_v34  ;;  %v3734_v41 = vld [vmem:[%s4167_s30 + $0x40] sm:$0xff] }
 0x253   : > { %3279 = vmatprep.subr.bf16.mxu1 %v3908_v30  ;;  %2186 = vmatpush1.bf16.msra.mxu0 %v3366_v9 }
 0x254   : > { %2187 = vmatprep.subr.bf16.mxu0 %v3371_v59 }
 0x256   : > { %3280 = vmatpush3.bf16.msra.mxu1 %v1449_v6 }
 0x257   : > { %2188 = vmatpush1.bf16.msra.mxu0 %v3369_v53  ;;  %v3739_v53 = vld [vmem:[%s4167_s30 + $0x68] sm:$0xff] }
 0x258   : > { %2189 = vmatprep.subr.bf16.mxu0 %v3374_v7 }
 0x259   : > { %3282 = vmatmul.mubr.msk.bf16.vlgmr.msra.gmra.mrb[28].mxu1 %vm1467_vm2, %v4547_v8 }
 0x25b   : > { %2190 = vmatpush1.bf16.msra.mxu0 %v3372_v62 }
 0x25c   : > { %2191 = vmatprep.subr.bf16.mxu0 %v3377_v24 }
 0x25f   : > { %2192 = vmatpush1.bf16.msra.mxu0 %v3375_v49  ;;  %v3741_v49 = vld [vmem:[%s4167_s30 + $0x78] sm:$0xff] }
 0x2f1   : > { %v1505_v35 = vpop.f32.mrb[16].mxu0 }
 0x2f2   : > { %v1506_v2 = vadd.f32 %v1505_v35, %v4665_v56  ;;  %v3227_v5 = vpop.f32.mrb[17].mxu0 }
 0x2f3   : > { %v1508_v40 = vpop.f32.mrb[18].mxu0 }
 0x2f4   : > { %v4671_v13 = vadd.f32 %v3726_v21, %v1506_v2  ;;  %v1509_v15 = vadd.f32 %v1508_v40, %v4668_v17  ;;  %v3228_v30 = vpop.f32.mrb[19].mxu0  ;;  %v3380_v40 = vld [vmem:[#allocation5 + $0x44] ss:$8 sps:$4 sm:$0xff]   ;;  %v3378_v21 = vld [vmem:[#allocation5 + $0x40] ss:$8 sps:$4 sm:$0xff]  }
 0x2f5   : > { %2193 = vmatprep.subr.bf16.mxu0 %v3380_v40 }
 0x2f6   : > { %v4675_v18 = vadd.f32 %v3727_v31, %v1509_v15  ;;  %1815 = vadd.xlane.f32.xlu1 %v4671_v13  ;;  %v1863_v8 = vmul.f32 %v4671_v13, %v4671_v13  ;;  %v3735_v15 = vld [vmem:[%s4167_s30 + $0x48] sm:$0xff]  ;;  %2194 = vmatpush1.bf16.msra.mxu0 %v3378_v21 }
 0x2f8   : > { %1817 = vadd.xlane.f32.xlu0 %v4675_v18  ;;  %v1864_v33 = vmul.f32 %v4675_v18, %v4675_v18 }
 0x2f9   : > { %v1546_v3 = vpop.f32.mrb[16].mxu1 }
 0x2fa   : > { %v1547_v19 = vadd.f32 %v1546_v3, %v4665_v56  ;;  %v3235_v28 = vpop.f32.mrb[17].mxu1  ;;  %1879 = vadd.xlane.f32.xlu1 %v1863_v8  ;;  %v3383_v8 = vld [vmem:[#allocation5 + $0x54] ss:$8 sps:$4 sm:$0xff]  }
 0x2fb   : > { %v1549_v0 = vpop.f32.mrb[18].mxu1  ;;  %2195 = vmatprep.subr.bf16.mxu0 %v3383_v8 }
 0x2fc   : > { %v4683_v32 = vadd.f32 %v3728_v52, %v1547_v19  ;;  %v1550_v26 = vadd.f32 %v1549_v0, %v4668_v17  ;;  %v3236_v27 = vpop.f32.mrb[19].mxu1  ;;  %v3381_v19 = vld [vmem:[#allocation5 + $0x50] ss:$8 sps:$4 sm:$0xff]  }
 0x2fd   : > { %2196 = vmatpush1.bf16.msra.mxu0 %v3381_v19  ;;  %v3736_v27 = vld [vmem:[%s4167_s30 + $0x50] sm:$0xff] }
 0x2fe   : > { %1819 = vadd.xlane.f32.xlu0 %v4683_v32  ;;  %1881 = vadd.xlane.f32.xlu1 %v1864_v33  ;;  %v4690_v58 = vadd.f32 %v3729_v4, %v1550_v26  ;;  %v1865_v45 = vmul.f32 %v4683_v32, %v4683_v32 }
 0x300   : > { %v1866_v25 = vmul.f32 %v4690_v58, %v4690_v58 }
 0x302   : > { %v1587_v14 = vpop.f32.mrb[20].mxu0  ;;  %1883 = vadd.xlane.f32.xlu0 %v1865_v45  ;;  %1821 = vadd.xlane.f32.xlu1 %v4690_v58 }
 0x303   : > { %v1588_v29 = vadd.f32 %v1587_v14, %v4665_v56  ;;  %v3243_v10 = vpop.f32.mrb[21].mxu0  ;;  %v3386_v14 = vld [vmem:[#allocation5 + $0x64] ss:$8 sps:$4 sm:$0xff]  }
 0x304   : > { %v1590_v36 = vpop.f32.mrb[22].mxu0  ;;  %v3737_v10 = vld [vmem:[%s4167_s30 + $0x58] sm:$0xff]  ;;  %2197 = vmatprep.subr.bf16.mxu0 %v3386_v14 }
 0x305   : > { %v4699_v50 = vadd.f32 %v3730_v39, %v1588_v29  ;;  %v1591_v42 = vadd.f32 %v1590_v36, %v4668_v17  ;;  %v3244_v1 = vpop.f32.mrb[23].mxu0  ;;  %v3384_v29 = vld [vmem:[#allocation5 + $0x60] ss:$8 sps:$4 sm:$0xff]   ;;  %v3389_v39 = vld [vmem:[#allocation5 + $0x74] ss:$8 sps:$4 sm:$0xff]  }
 0x306   : > { %1885 = vadd.xlane.f32.xlu1 %v1866_v25  ;;  %2198 = vmatpush1.bf16.msra.mxu0 %v3384_v29 }
 0x307   : > { %1823 = vadd.xlane.f32.xlu0 %v4699_v50  ;;  %v4704_v22 = vadd.f32 %v3731_v20, %v1591_v42  ;;  %v1867_v48 = vmul.f32 %v4699_v50, %v4699_v50  ;;  %v3387_v42 = vld [vmem:[#allocation5 + $0x70] ss:$8 sps:$4 sm:$0xff]   ;;  %2199 = vmatprep.subr.bf16.mxu0 %v3389_v39 }
 0x309   : > { %v1868_v47 = vmul.f32 %v4704_v22, %v4704_v22 }
 0x30a   : > { %v1628_v51 = vpop.f32.mrb[20].mxu1  ;;  %1825 = vadd.xlane.f32.xlu1 %v4704_v22  ;;  %2200 = vmatpush1.bf16.msra.mxu0 %v3387_v42 }
 0x30b   : > { %v1629_v60 = vadd.f32 %v1628_v51, %v4665_v56  ;;  %v3251_v57 = vpop.f32.mrb[21].mxu1  ;;  %1887 = vadd.xlane.f32.xlu0 %v1867_v48  ;;  %v3738_v51 = vld [vmem:[%s4167_s30 + $0x60] sm:$0xff] }
 0x30c   : > { %v1631_v55 = vpop.f32.mrb[22].mxu1 }
 0x30d   : > { %v4713_v43 = vadd.f32 %v3732_v12, %v1629_v60  ;;  %v1632_v38 = vadd.f32 %v1631_v55, %v4668_v17  ;;  %v3252_v61 = vpop.f32.mrb[23].mxu1 }
 0x30e   : > { %1889 = vadd.xlane.f32.xlu1 %v1868_v47 }
 0x30f   : > { %1827 = vadd.xlane.f32.xlu0 %v4713_v43  ;;  %v4718_v54 = vadd.f32 %v3733_v46, %v1632_v38  ;;  %v1869_v11 = vmul.f32 %v4713_v43, %v4713_v43  ;;  %v3740_v46 = vld [vmem:[%s4167_s30 + $0x70] sm:$0xff]  ;;  %s2817_s30 = sshll.u32 %s5073_s16, 4  ;;  %s5124_s30 = int_to_ptr.vmem [resolvable:$true] %s2817_s30 }
 0x310   : > { %s3828_s12 = scalar_lea.vmem %s5124_s30, 2048 }
 0x311   : > { %v1870_v37 = vmul.f32 %v4718_v54, %v4718_v54  ;;  %p3829_p11 = scmp.ne.s32.totalorder %s5124_s30, %s3828_s12 }
 0x312   : > { %1829 = vadd.xlane.f32.xlu1 %v4718_v54 }
 0x313   : > { %v1669_v44 = vpop.f32.mrb[24].mxu0  ;;  %1891 = vadd.xlane.f32.xlu0 %v1869_v11  ;;  %p3830_p2 = pnand %p3829_p11, %p5213_p0 }
 0x314   : > { %v1670_v16 = vadd.f32 %v1669_v44, %v4665_v56  ;;  %v3259_v63 = vpop.f32.mrb[25].mxu0 }
 0x315   : > { %v1672_v6 = vpop.f32.mrb[26].mxu0  ;;  %p3831_p3 = pneg %p3830_p2 }
 0x316   : > { %v4727_v35 = vadd.f32 %v3734_v41, %v1670_v16  ;;  %v1673_v2 = vadd.f32 %v1672_v6, %v4668_v17  ;;  %v3260_v5 = vpop.f32.mrb[27].mxu0  ;;  %1893 = vadd.xlane.f32.xlu1 %v1870_v37 }
 0x318   : > { %v4731_v30 = vadd.f32 %v3735_v15, %v1673_v2  ;;  %1831 = vadd.xlane.f32.xlu0 %v4727_v35  ;;  %v1871_v31 = vmul.f32 %v4727_v35, %v4727_v35 }
 0x31a   : > { %1833 = vadd.xlane.f32.xlu1 %v4731_v30  ;;  %v1872_v52 = vmul.f32 %v4731_v30, %v4731_v30 }
 0x31b   : > { %v1710_v3 = vpop.f32.mrb[24].mxu1 }
 0x31c   : > { %v1711_v28 = vadd.f32 %v1710_v3, %v4665_v56  ;;  %v3267_v0 = vpop.f32.mrb[25].mxu1  ;;  %1895 = vadd.xlane.f32.xlu0 %v1871_v31 }
 0x31d   : > { %v1713_v26 = vpop.f32.mrb[26].mxu1 }
 0x31e   : > { %v4741_v33 = vadd.f32 %v3736_v27, %v1711_v28  ;;  %v1714_v4 = vadd.f32 %v1713_v26, %v4668_v17  ;;  %v3268_v45 = vpop.f32.mrb[27].mxu1  ;;  %1897 = vadd.xlane.f32.xlu1 %v1872_v52 }
 0x320   : > { %v4745_v36 = vadd.f32 %v3737_v10, %v1714_v4  ;;  %1835 = vadd.xlane.f32.xlu0 %v4741_v33  ;;  %v1873_v25 = vmul.f32 %v4741_v33, %v4741_v33 }
 0x322   : > { %1837 = vadd.xlane.f32.xlu1 %v4745_v36  ;;  %v1874_v9 = vmul.f32 %v4745_v36, %v4745_v36 }
 0x324   : > { %v1751_v1 = vpop.f32.mrb[28].mxu0  ;;  %1899 = vadd.xlane.f32.xlu0 %v1873_v25 }
 0x325   : > { %v1752_v23 = vadd.f32 %v1751_v1, %v4665_v56  ;;  %v3275_v20 = vpop.f32.mrb[29].mxu0 }
 0x326   : > { %v1754_v48 = vpop.f32.mrb[30].mxu0  ;;  %1901 = vadd.xlane.f32.xlu1 %v1874_v9 }
 0x327   : > { %v4755_v59 = vadd.f32 %v3738_v51, %v1752_v23  ;;  %v1755_v60 = vadd.f32 %v1754_v48, %v4668_v17  ;;  %v3276_v57 = vpop.f32.mrb[31].mxu0 }
 0x329   : > { %v4759_v55 = vadd.f32 %v3739_v53, %v1755_v60  ;;  %1839 = vadd.xlane.f32.xlu0 %v4755_v59  ;;  %v1875_v47 = vmul.f32 %v4755_v59, %v4755_v59 }
 0x32b   : > { %1841 = vadd.xlane.f32.xlu1 %v4759_v55  ;;  %v1876_v7 = vmul.f32 %v4759_v55, %v4759_v55 }
 0x32c   : > { %v1792_v12 = vpop.f32.mrb[28].mxu1 }
 0x32d   : > { %v1793_v38 = vadd.f32 %v1792_v12, %v4665_v56  ;;  %v3283_v61 = vpop.f32.mrb[29].mxu1  ;;  %1903 = vadd.xlane.f32.xlu0 %v1875_v47 }
 0x32e   : > { %v1795_v62 = vpop.f32.mrb[30].mxu1  ;;  %v4791_v61 = vld [vmem:[%s5178_s7] ss:$0 sm:$0xff] }
 0x32f   : > { %v4769_v11 = vadd.f32 %v3740_v46, %v1793_v38  ;;  %v1796_v24 = vadd.f32 %v1795_v62, %v4668_v17  ;;  %v3284_v44 = vpop.f32.mrb[31].mxu1  ;;  %1905 = vadd.xlane.f32.xlu1 %v1876_v7 }
 0x331   : > { %v4773_v16 = vadd.f32 %v3741_v49, %v1796_v24  ;;  %1843 = vadd.xlane.f32.xlu0 %v4769_v11  ;;  %v1877_v56 = vmul.f32 %v4769_v11, %v4769_v11 }
 0x333   : > { %1845 = vadd.xlane.f32.xlu1 %v4773_v16  ;;  %v1878_v63 = vmul.f32 %v4773_v16, %v4773_v16 }
 0x335   : > { %1907 = vadd.xlane.f32.xlu0 %v1877_v56 }
 0x337   : > { %1909 = vadd.xlane.f32.xlu1 %v1878_v63 }
 0x383   : > { %v1816_v37 = vpop.xlane.xlu1 %1815 }
 0x384   : > { %v1847_v6 = vmul.f32 0.0078125, %v1816_v37 }
 0x385   : > { %v1818_v17 = vpop.xlane.xlu0 %1817 }
 0x386   : > { %v1927_v2 = vmul.f32 %v1847_v6, %v1847_v6  ;;  %v1848_v5 = vmul.f32 0.0078125, %v1818_v17  ;;  %v1991_v20 = vsub.f32 %v4671_v13, %v1847_v6 }
 0x387   : > { %v1880_v41 = vpop.xlane.xlu1 %1879 }
 0x388   : > { %v1911_v40 = vmul.f32 0.0078125, %v1880_v41  ;;  %v1928_v8 = vmul.f32 %v1848_v5, %v1848_v5  ;;  %v1992_v7 = vsub.f32 %v4675_v18, %v1848_v5  ;;  %v4802_v41 = vld [vmem:[%s5179_s8] ss:$0 sm:$0xff] }
 0x38a   : > { %v1943_v21 = vsub.f32 %v1911_v40, %v1927_v2 }
 0x38b   : > { %v1820_v15 = vpop.xlane.xlu0 %1819  ;;  %v1882_v31 = vpop.xlane.xlu1 %1881 }
 0x38c   : > { %v1959_v3 = vadd.f32 1e-05, %v1943_v21  ;;  %v1849_v19 = vmul.f32 0.0078125, %v1820_v15  ;;  %v1912_v28 = vmul.f32 0.0078125, %v1882_v31 }
 0x38e   : > { %3566 = vrsqrt.f32 %v1959_v3  ;;  %v1944_v0 = vsub.f32 %v1912_v28, %v1928_v8  ;;  %v1929_v27 = vmul.f32 %v1849_v19, %v1849_v19  ;;  %v1993_v5 = vsub.f32 %v4683_v32, %v1849_v19 }
 0x38f   : > { %v1884_v52 = vpop.xlane.xlu0 %1883  ;;  %v1822_v26 = vpop.xlane.xlu1 %1821 }
 0x390   : > { %v1960_v4 = vadd.f32 1e-05, %v1944_v0  ;;  %v1913_v45 = vmul.f32 0.0078125, %v1884_v52  ;;  %v1850_v14 = vmul.f32 0.0078125, %v1822_v26 }
 0x392   : > { %3568 = vrsqrt.f32 %v1960_v4  ;;  %v1945_v29 = vsub.f32 %v1913_v45, %v1929_v27  ;;  %v1930_v39 = vmul.f32 %v1850_v14, %v1850_v14  ;;  %v1994_v19 = vsub.f32 %v4690_v58, %v1850_v14 }
 0x393   : > { %v1886_v10 = vpop.xlane.xlu1 %1885 }
 0x394   : > { %v1961_v25 = vadd.f32 1e-05, %v1945_v29  ;;  %v1824_v42 = vpop.xlane.xlu0 %1823  ;;  %v1914_v1 = vmul.f32 0.0078125, %v1886_v10 }
 0x395   : > { %v4781_v9 = vmul.f32 0.0078125, %v1824_v42 }
 0x396   : > { %3570 = vrsqrt.f32 %v1961_v25  ;;  %v1946_v23 = vsub.f32 %v1914_v1, %v1930_v39 }
 0x397   : > { %v1826_v48 = vpop.xlane.xlu1 %1825  ;;  %v1931_v47 = vmul.f32 %v4781_v9, %v4781_v9 }
 0x398   : > { %v3567_v51 = vpop.eup %3566  ;;  %v1962_v60 = vadd.f32 1e-05, %v1946_v23  ;;  %v1888_v57 = vpop.xlane.xlu0 %1887  ;;  %v4784_v53 = vmul.f32 0.0078125, %v1826_v48 }
 0x399   : > { %v1915_v12 = vmul.f32 0.0078125, %v1888_v57  ;;  %v2007_v38 = vmul.f32 %v3567_v51, %v1991_v20 }
 0x39a   : > { %3572 = vrsqrt.f32 %v1962_v60  ;;  %v1932_v44 = vmul.f32 %v4784_v53, %v4784_v53 }
 0x39b   : > { %v1947_v62 = vsub.f32 %v1915_v12, %v1931_v47  ;;  %v1890_v46 = vpop.xlane.xlu1 %1889  ;;  %v2030_v63 = vmul.f32 %v4791_v61, %v2007_v38  ;;  %v1995_v38 = vsub.f32 %v4699_v50, %v4781_v9 }
 0x39c   : > { %v3569_v24 = vpop.eup %3568  ;;  %v1828_v49 = vpop.xlane.xlu0 %1827  ;;  %v1916_v56 = vmul.f32 0.0078125, %v1890_v46 }
 0x39d   : > { %v1963_v37 = vadd.f32 1e-05, %v1947_v62  ;;  %v4797_v6 = vmul.f32 0.0078125, %v1828_v49  ;;  %v2008_v17 = vmul.f32 %v3569_v24, %v1992_v7  ;;  %v2053_v28 = vadd.f32 %v4802_v41, %v2030_v63 }
 0x39e   : > { %v1948_v2 = vsub.f32 %v1916_v56, %v1932_v44  ;;  %v1996_v49 = vsub.f32 %v4704_v22, %v4784_v53 }
 0x39f   : > { %3574 = vrsqrt.f32 %v1963_v37  ;;  %v1830_v40 = vpop.xlane.xlu1 %1829  ;;  %v2031_v21 = vmul.f32 %v4791_v61, %v2008_v17  ;;  %v1933_v0 = vmul.f32 %v4797_v6, %v4797_v6 }
 0x3a0   : > { %v3571_v15 = vpop.eup %3570  ;;  %v1964_v31 = vadd.f32 1e-05, %v1948_v2  ;;  %v1892_v8 = vpop.xlane.xlu0 %1891  ;;  %v4806_v3 = vmul.f32 0.0078125, %v1830_v40 }
 0x3a1   : > { %v1917_v52 = vmul.f32 0.0078125, %v1892_v8  ;;  %v2054_v26 = vadd.f32 %v4802_v41, %v2031_v21  ;;  %v2009_v27 = vmul.f32 %v3571_v15, %v1993_v5 }
 0x3a2   : > { %3576 = vrsqrt.f32 %v1964_v31  ;;  %v1934_v25 = vmul.f32 %v4806_v3, %v4806_v3 }
 0x3a3   : > { %v1949_v4 = vsub.f32 %v1917_v52, %v1933_v0  ;;  %v1894_v45 = vpop.xlane.xlu1 %1893  ;;  %v2069_v29 = vpack.c.bf16 %v2054_v26, %v2053_v28  ;;  %v2032_v20 = vmul.f32 %v4791_v61, %v2009_v27  ;;  %v1997_v52 = vsub.f32 %v4713_v43, %v4797_v6 }
 0x3a4   : > { %v3573_v10 = vpop.eup %3572  ;;  %v1918_v39 = vmul.f32 0.0078125, %v1894_v45 }
 0x3a5   : > { %v1965_v42 = vadd.f32 1e-05, %v1949_v4  ;;  %v1832_v1 = vpop.xlane.xlu0 %1831  ;;  %2218 = vmatmul.mubr.bf16.vlgmr.msra.gmra.mrb[32].mxu0 %v2069_v29  ;;  %v2010_v23 = vmul.f32 %v3573_v10, %v1994_v19  ;;  %v2055_v62 = vadd.f32 %v4802_v41, %v2032_v20 }
 0x3a6   : > { %v4816_v48 = vmul.f32 0.0078125, %v1832_v1  ;;  %v1950_v51 = vsub.f32 %v1918_v39, %v1934_v25  ;;  %2227 = vmatprep.mubr.bf16.mxu0 %v3907_v34 }
 0x3a7   : > { %3578 = vrsqrt.f32 %v1965_v42  ;;  %v1834_v14 = vpop.xlane.xlu1 %1833  ;;  %v2033_v60 = vmul.f32 %v4791_v61, %v2010_v23  ;;  %v1998_v42 = vsub.f32 %v4718_v54, %v4806_v3 }
 0x3a8   : > { %v1966_v57 = vadd.f32 1e-05, %v1950_v51  ;;  %v4820_v47 = vmul.f32 0.0078125, %v1834_v14  ;;  %v1935_v24 = vmul.f32 %v4816_v48, %v4816_v48 }
 0x3a9   : > { %v3575_v12 = vpop.eup %3574  ;;  %v1896_v7 = vpop.xlane.xlu0 %1895  ;;  %v2056_v46 = vadd.f32 %v4802_v41, %v2033_v60 }
 0x3aa   : > { %3580 = vrsqrt.f32 %v1966_v57  ;;  %v1919_v44 = vmul.f32 0.0078125, %v1896_v7  ;;  %v2011_v37 = vmul.f32 %v3575_v12, %v1995_v38  ;;  %v1936_v9 = vmul.f32 %v4820_v47, %v4820_v47 }
 0x3ab   : > { %v1898_v56 = vpop.xlane.xlu1 %1897  ;;  %v2070_v63 = vpack.c.bf16 %v2056_v46, %v2055_v62 }
 0x3ac   : > { %v3577_v17 = vpop.eup %3576  ;;  %v1951_v2 = vsub.f32 %v1919_v44, %v1935_v24  ;;  %v1920_v5 = vmul.f32 0.0078125, %v1898_v56  ;;  %v2034_v15 = vmul.f32 %v4791_v61, %v2011_v37  ;;  %v1999_v37 = vsub.f32 %v4727_v35, %v4816_v48 }
 0x3ad   : > { %v1836_v40 = vpop.xlane.xlu0 %1835  ;;  %2228 = vmatmul.mubr.bf16.gmra.mrb[36].mxu0 %v2070_v63  ;;  %v2012_v21 = vmul.f32 %v3577_v17, %v1996_v49 }
 0x3ae   : > { %v1967_v31 = vadd.f32 1e-05, %v1951_v2  ;;  %v4833_v8 = vmul.f32 0.0078125, %v1836_v40  ;;  %v1952_v28 = vsub.f32 %v1920_v5, %v1936_v9  ;;  %2237 = vmatprep.mubr.bf16.mxu0 %v3907_v34  ;;  %v2057_v45 = vadd.f32 %v4802_v41, %v2034_v15 }
 0x3af   : > { %v1838_v53 = vpop.xlane.xlu1 %1837  ;;  %v2035_v0 = vmul.f32 %v4791_v61, %v2012_v21  ;;  %v2000_v2 = vsub.f32 %v4731_v30, %v4820_v47 }
 0x3b0   : > { %3582 = vrsqrt.f32 %v1967_v31  ;;  %v1968_v26 = vadd.f32 1e-05, %v1952_v28  ;;  %v4839_v4 = vmul.f32 0.0078125, %v1838_v53  ;;  %v1937_v10 = vmul.f32 %v4833_v8, %v4833_v8 }
 0x3b1   : > { %v3579_v27 = vpop.eup %3578  ;;  %v1900_v19 = vpop.xlane.xlu0 %1899  ;;  %v2058_v29 = vadd.f32 %v4802_v41, %v2035_v0 }
 0x3b2   : > { %3584 = vrsqrt.f32 %v1968_v26  ;;  %v1921_v25 = vmul.f32 0.0078125, %v1900_v19  ;;  %v2013_v39 = vmul.f32 %v3579_v27, %v1997_v52  ;;  %v1938_v51 = vmul.f32 %v4839_v4, %v4839_v4 }
 0x3b3   : > { %v1902_v6 = vpop.xlane.xlu1 %1901  ;;  %v2071_v1 = vpack.c.bf16 %v2058_v29, %v2057_v45 }
 0x3b4   : > { %v3581_v23 = vpop.eup %3580  ;;  %v1953_v20 = vsub.f32 %v1921_v25, %v1937_v10  ;;  %v1922_v14 = vmul.f32 0.0078125, %v1902_v6  ;;  %v2036_v57 = vmul.f32 %v4791_v61, %v2013_v39  ;;  %v2001_v10 = vsub.f32 %v4741_v33, %v4833_v8 }
 0x3b5   : > { %2238 = vmatmul.mubr.bf16.gmra.mrb[40].mxu0 %v2071_v1  ;;  %v2014_v60 = vmul.f32 %v3581_v23, %v1998_v42  ;;  %v2002_v42 = vsub.f32 %v4745_v36, %v4839_v4 }
 0x3b6   : > { %v1969_v12 = vadd.f32 1e-05, %v1953_v20  ;;  %v1840_v38 = vpop.xlane.xlu0 %1839  ;;  %v1954_v7 = vsub.f32 %v1922_v14, %v1938_v51  ;;  %2247 = vmatprep.mubr.bf16.mxu0 %v3907_v34  ;;  %v2059_v49 = vadd.f32 %v4802_v41, %v2036_v57 }
 0x3b7   : > { %v4851_v62 = vmul.f32 0.0078125, %v1840_v38  ;;  %v2037_v3 = vmul.f32 %v4791_v61, %v2014_v60 }
 0x3b8   : > { %3586 = vrsqrt.f32 %v1969_v12  ;;  %v1970_v46 = vadd.f32 1e-05, %v1954_v7  ;;  %v1842_v24 = vpop.xlane.xlu1 %1841 }
 0x3b9   : > { %v4854_v44 = vmul.f32 0.0078125, %v1842_v24  ;;  %v2060_v56 = vadd.f32 %v4802_v41, %v2037_v3  ;;  %v1939_v9 = vmul.f32 %v4851_v62, %v4851_v62 }
 0x3ba   : > { %v3583_v63 = vpop.eup %3582  ;;  %3588 = vrsqrt.f32 %v1970_v46  ;;  %v1904_v17 = vpop.xlane.xlu0 %1903 }
 0x3bb   : > { %v1923_v5 = vmul.f32 0.0078125, %v1904_v17  ;;  %v2072_v40 = vpack.c.bf16 %v2060_v56, %v2059_v49  ;;  %v2015_v31 = vmul.f32 %v3583_v63, %v1999_v37  ;;  %v1940_v53 = vmul.f32 %v4854_v44, %v4854_v44 }
 0x3bc   : > { %v3585_v21 = vpop.eup %3584  ;;  %v1906_v15 = vpop.xlane.xlu1 %1905 }
 0x3bd   : > { %v1955_v28 = vsub.f32 %v1923_v5, %v1939_v9  ;;  %v1924_v0 = vmul.f32 0.0078125, %v1906_v15  ;;  %2248 = vmatmul.mubr.bf16.gmra.mrb[44].mxu0 %v2072_v40  ;;  %v2016_v48 = vmul.f32 %v3585_v21, %v2000_v2  ;;  %v2038_v47 = vmul.f32 %v4791_v61, %v2015_v31 }
 0x3be   : > { %v1844_v52 = vpop.xlane.xlu0 %1843  ;;  %2257 = vmatprep.mubr.bf16.mxu0 %v3907_v34  ;;  %v2003_v2 = vsub.f32 %v4755_v59, %v4851_v62  ;;  %v2004_v40 = vsub.f32 %v4759_v55, %v4854_v44 }
 0x3bf   : > { %v1971_v26 = vadd.f32 1e-05, %v1955_v28  ;;  %v1861_v27 = vmul.f32 0.0078125, %v1844_v52  ;;  %v1956_v19 = vsub.f32 %v1924_v0, %v1940_v53  ;;  %v2039_v45 = vmul.f32 %v4791_v61, %v2016_v48 }
 0x3c0   : > { %v1846_v29 = vpop.xlane.xlu1 %1845  ;;  %v2061_v23 = vadd.f32 %v4802_v41, %v2038_v47 }
 0x3c1   : > { %3590 = vrsqrt.f32 %v1971_v26  ;;  %v1972_v25 = vadd.f32 1e-05, %v1956_v19  ;;  %v1862_v1 = vmul.f32 0.0078125, %v1846_v29  ;;  %v2062_v20 = vadd.f32 %v4802_v41, %v2039_v45 }
 0x3c2   : > { %v3587_v39 = vpop.eup %3586  ;;  %v1908_v6 = vpop.xlane.xlu0 %1907  ;;  %v1941_v51 = vmul.f32 %v1861_v27, %v1861_v27  ;;  %v2005_v0 = vsub.f32 %v4769_v11, %v1861_v27 }
 0x3c3   : > { %3592 = vrsqrt.f32 %v1972_v25  ;;  %v1925_v14 = vmul.f32 0.0078125, %v1908_v6  ;;  %v2017_v60 = vmul.f32 %v3587_v39, %v2001_v10  ;;  %v1942_v12 = vmul.f32 %v1862_v1, %v1862_v1  ;;  %v3391_v6 = vld [vmem:[#allocation7] sm:$0xff]  }
 0x3c4   : > { %v3589_v57 = vpop.eup %3588  ;;  %v1910_v38 = vpop.xlane.xlu1 %1909  ;;  %v2073_v8 = vpack.c.bf16 %v2062_v20, %v2061_v23  ;;  %v2006_v47 = vsub.f32 %v4773_v16, %v1862_v1  ;;  %v3392_v1 = vld [vmem:[#allocation7 + $0x48] sm:$0xff]   ;;  %v3394_v20 = vld [vmem:[#allocation7 + $0x50] sm:$0xff]  }
 0x3c5   : > { %v1957_v7 = vsub.f32 %v1925_v14, %v1941_v51  ;;  %v1926_v3 = vmul.f32 0.0078125, %v1910_v38  ;;  %v2018_v46 = vmul.f32 %v3589_v57, %v2002_v42  ;;  %v2040_v24 = vmul.f32 %v4791_v61, %v2017_v60  ;;  %v3390_v42 = vld [vmem:[#allocation7 + $0x40] sm:$0xff]   ;;  %v3393_v23 = vld [vmem:[#allocation7 + $0x8] sm:$0xff]   ;;  %v3395_v51 = vld [vmem:[#allocation7 + $0x10] sm:$0xff]  }
 0x3c6   : > { %2258 = vmatmul.mubr.bf16.gmra.mrb[48].mxu0 %v2073_v8  ;;  %3109 = vmatprep.subr.bf16.mxu1 %v3390_v42  ;;  %v3398_v14 = vld [vmem:[#allocation7 + $0x60] sm:$0xff]   ;;  %v3400_v60 = vld [vmem:[#allocation7 + $0x68] sm:$0xff]   ;;  %v3403_v38 = vld [vmem:[#allocation7 + $0x30] sm:$0xff]  }
 0x3c7   : > { %v1973_v4 = vadd.f32 1e-05, %v1957_v7  ;;  %v1958_v49 = vsub.f32 %v1926_v3, %v1942_v12  ;;  %2267 = vmatprep.mubr.bf16.mxu0 %v3907_v34  ;;  %v2041_v56 = vmul.f32 %v4791_v61, %v2018_v46  ;;  %v2063_v37 = vadd.f32 %v4802_v41, %v2040_v24  ;;  %3110 = vmatpush3.bf16.msra.mxu1 %v3391_v6  ;;  %v3401_v57 = vld [vmem:[#allocation7 + $0x28] sm:$0xff]   ;;  %v3402_v12 = vld [vmem:[#allocation7 + $0x70] sm:$0xff]   ;;  %v3404_v8 = vld [vmem:[#allocation7 + $0x78] sm:$0xff]  }
 0x3c8   : > { %3111 = vmatprep.subr.bf16.mxu1 %v3392_v1  ;;  %v3405_v7 = vld [vmem:[#allocation7 + $0x38] sm:$0xff]   ;;  %v2095_v3 = vlaneseq }
 0x3c9   : > { %3594 = vrsqrt.f32 %v1973_v4  ;;  %v1974_v63 = vadd.f32 1e-05, %v1958_v49  ;;  %v2064_v17 = vadd.f32 %v4802_v41, %v2041_v56  ;;  %v2093_v4 = vld [vmem:[%s5210_s15] sm:$0x3]  ;;  %s3910_s15 = smov [#allocation8]  }
 0x3ca   : > { %v2096_v46 = vshrl.u32 %v2095_v3, 7  ;;  %s3832_s10 = sshll.u32 %s3910_s15, 4  ;;  %s3833_s10 = int_to_ptr.vmem [resolvable:$false] %s3832_s10 }
 0x3cb   : > { %v3591_v9 = vpop.eup %3590  ;;  %3596 = vrsqrt.f32 %v1974_v63  ;;  %v2074_v5 = vpack.c.bf16 %v2064_v17, %v2063_v37  ;;  %3112 = vmatpush3.bf16.msra.mxu1 %v3393_v23  ;;  %s3834_s18 = scalar_lea.vmem %s3833_s10, 4096  ;;  %p3835_p5 = scmp.lt.s32.totalorder %s5124_s30, %s3833_s10 }
 0x3cc   : > { %v2019_v21 = vmul.f32 %v3591_v9, %v2003_v2  ;;  %3113 = vmatprep.subr.bf16.mxu1 %v3394_v20  ;;  %v2097_v24 = vsub.s32 0, %v2096_v46  ;;  %v2101_v49 = vsub.s32 1, %v2096_v46  ;;  %p3836_p9 = scmp.lt.s32.totalorder %s3834_s18, %s3828_s12 }
 0x3cd   : > { %v3593_v15 = vpop.eup %3592 }
 0x3ce   : > { %2268 = vmatmul.mubr.bf16.gmra.mrb[52].mxu0 %v2074_v5  ;;  %v2020_v31 = vmul.f32 %v3593_v15, %v2004_v40  ;;  %v2042_v28 = vmul.f32 %v4791_v61, %v2019_v21  ;;  %v4899_v56 = vrot.slane %v2093_v4, %v2097_v24  ;;  %v4901_v63 = vrot.slane %v2093_v4, %v2101_v49  ;;  %p3837_p12 = por %p3836_p9, %p3835_p5 }
 0x3cf   : > { %2277 = vmatprep.mubr.bf16.mxu0 %v3907_v34  ;;  %3114 = vmatpush3.bf16.msra.mxu1 %v3395_v51 }
 0x3d0   : > { %v2043_v53 = vmul.f32 %v4791_v61, %v2020_v31  ;;  %v2065_v62 = vadd.f32 %v4802_v41, %v2042_v28  ;;  %p3838_p1 = pnand %p3837_p12, %p3831_p3 }
 0x3d2   : > { %v2066_v48 = vadd.f32 %v4802_v41, %v2043_v53 }
 0x3d3   : > { %v3595_v52 = vpop.eup %3594 }
 0x3d4   : > { %v2075_v44 = vpack.c.bf16 %v2066_v48, %v2065_v62  ;;  %v2021_v26 = vmul.f32 %v3595_v52, %v2005_v0 }
 0x3d5   : > { %v3597_v19 = vpop.eup %3596 }
 0x3d6   : > { %2278 = vmatmul.mubr.bf16.gmra.mrb[56].mxu0 %v2075_v44  ;;  %v2022_v45 = vmul.f32 %v3597_v19, %v2006_v47  ;;  %v2044_v29 = vmul.f32 %v4791_v61, %v2021_v26 }
 0x3d7   : > { %2287 = vmatprep.mubr.bf16.mxu0 %v3907_v34  ;;  %v3396_v34 = vld [vmem:[#allocation7 + $0x58] sm:$0xff]  }
 0x3d8   : > { %v2045_v10 = vmul.f32 %v4791_v61, %v2022_v45  ;;  %v2067_v27 = vadd.f32 %v4802_v41, %v2044_v29  ;;  %v3397_v61 = vld [vmem:[#allocation7 + $0x18] sm:$0xff]   ;;  %3115 = vmatprep.subr.bf16.mxu1 %v3396_v34 }
 0x3d9   : > { %3116 = vmatpush3.bf16.msra.mxu1 %v3397_v61 }
 0x3da   : > { %v2068_v25 = vadd.f32 %v4802_v41, %v2045_v10  ;;  %v3399_v41 = vld [vmem:[#allocation7 + $0x20] sm:$0xff]   ;;  %3117 = vmatprep.subr.bf16.mxu1 %v3398_v14 }
 0x3dc   : > { %v2076_v39 = vpack.c.bf16 %v2068_v25, %v2067_v27 }
 0x3dd   : > { %3118 = vmatpush3.bf16.msra.mxu1 %v3399_v41 }
 0x3de   : > { %2288 = vmatmul.mubr.bf16.gmra.mrb[60].mxu0 %v2076_v39  ;;  %3119 = vmatprep.subr.bf16.mxu1 %v3400_v60 }
 0x3e1   : > { %3120 = vmatpush3.bf16.msra.mxu1 %v3401_v57 }
 0x3e2   : > { %3121 = vmatprep.subr.bf16.mxu1 %v3402_v12 }
 0x3e5   : > { %3122 = vmatpush3.bf16.msra.mxu1 %v3403_v38 }
 0x3e6   : > { %3123 = vmatprep.subr.bf16.mxu1 %v3404_v8 }
 0x3e9   : > { %3124 = vmatpush3.bf16.msra.mxu1 %v3405_v7 }
 0x478   : > { %v2219_v37 = vpop.f32.mrb[32].mxu0 }
 0x479   : > { %v4904_v17 = vadd.f32 %v2219_v37, %v4899_v56  ;;  %v2221_v2 = vpop.f32.mrb[33].mxu0 }
 0x47a   : > { %v4907_v9 = vadd.f32 %v2221_v2, %v4901_v63  ;;  %v2223_v5 = vpop.f32.mrb[34].mxu0 }
 0x47b   : > { %v3002_v40 = vmul.f32 -1.442695, %v4904_v17  ;;  %v4911_v21 = vadd.f32 %v2223_v5, %v4899_v56  ;;  %v2225_v15 = vpop.f32.mrb[35].mxu0 }
 0x47c   : > { %v3003_v31 = vmul.f32 -1.442695, %v4907_v9  ;;  %v4915_v28 = vadd.f32 %v2225_v15, %v4901_v63 }
 0x47d   : > { %3598 = vpow2.f32 %v3002_v40  ;;  %v3004_v53 = vmul.f32 -1.442695, %v4911_v21 }
 0x47e   : > { %3600 = vpow2.f32 %v3003_v31  ;;  %v3005_v0 = vmul.f32 -1.442695, %v4915_v28 }
 0x47f   : > { %3602 = vpow2.f32 %v3004_v53 }
 0x480   : > { %3604 = vpow2.f32 %v3005_v0  ;;  %v2229_v62 = vpop.f32.mrb[36].mxu0 }
 0x481   : > { %v4920_v48 = vadd.f32 %v2229_v62, %v4899_v56  ;;  %v2231_v52 = vpop.f32.mrb[37].mxu0 }
 0x482   : > { %v4923_v47 = vadd.f32 %v2231_v52, %v4901_v63  ;;  %v2233_v44 = vpop.f32.mrb[38].mxu0 }
 0x483   : > { %v3006_v26 = vmul.f32 -1.442695, %v4920_v48  ;;  %v4927_v19 = vadd.f32 %v2233_v44, %v4899_v56  ;;  %v2235_v45 = vpop.f32.mrb[39].mxu0 }
 0x484   : > { %v3007_v29 = vmul.f32 -1.442695, %v4923_v47  ;;  %v4931_v10 = vadd.f32 %v2235_v45, %v4901_v63 }
 0x485   : > { %3606 = vpow2.f32 %v3006_v26  ;;  %v3008_v27 = vmul.f32 -1.442695, %v4927_v19 }
 0x486   : > { %3608 = vpow2.f32 %v3007_v29  ;;  %v3009_v25 = vmul.f32 -1.442695, %v4931_v10 }
 0x487   : > { %v3599_v39 = vpop.eup %3598  ;;  %3610 = vpow2.f32 %v3008_v27 }
 0x488   : > { %v3601_v42 = vpop.eup %3600  ;;  %v2394_v6 = vadd.f32 1.0, %v3599_v39  ;;  %3612 = vpow2.f32 %v3009_v25  ;;  %v2239_v1 = vpop.f32.mrb[40].mxu0 }
 0x489   : > { %v3603_v23 = vpop.eup %3602  ;;  %v2395_v20 = vadd.f32 1.0, %v3601_v42  ;;  %v4936_v51 = vadd.f32 %v2239_v1, %v4899_v56  ;;  %v2241_v34 = vpop.f32.mrb[41].mxu0 }
 0x48a   : > { %v3605_v61 = vpop.eup %3604  ;;  %3614 = vrcp.f32 %v2394_v6  ;;  %v2396_v14 = vadd.f32 1.0, %v3603_v23  ;;  %v4939_v41 = vadd.f32 %v2241_v34, %v4901_v63  ;;  %v2243_v60 = vpop.f32.mrb[42].mxu0 }
 0x48b   : > { %3616 = vrcp.f32 %v2395_v20  ;;  %v2397_v57 = vadd.f32 1.0, %v3605_v61  ;;  %v3010_v12 = vmul.f32 -1.442695, %v4936_v51  ;;  %v4943_v38 = vadd.f32 %v2243_v60, %v4899_v56  ;;  %v2245_v8 = vpop.f32.mrb[43].mxu0 }
 0x48c   : > { %3618 = vrcp.f32 %v2396_v14  ;;  %v3011_v7 = vmul.f32 -1.442695, %v4939_v41  ;;  %v4947_v3 = vadd.f32 %v2245_v8, %v4901_v63 }
 0x48d   : > { %3620 = vrcp.f32 %v2397_v57  ;;  %v3012_v46 = vmul.f32 -1.442695, %v4943_v38 }
 0x48e   : > { %3622 = vpow2.f32 %v3010_v12  ;;  %v3013_v24 = vmul.f32 -1.442695, %v4947_v3 }
 0x48f   : > { %v3607_v4 = vpop.eup %3606  ;;  %3624 = vpow2.f32 %v3011_v7 }
 0x490   : > { %v3609_v49 = vpop.eup %3608  ;;  %v2398_v37 = vadd.f32 1.0, %v3607_v4  ;;  %3626 = vpow2.f32 %v3012_v46  ;;  %v2249_v2 = vpop.f32.mrb[44].mxu0 }
 0x491   : > { %v3611_v5 = vpop.eup %3610  ;;  %v2399_v40 = vadd.f32 1.0, %v3609_v49  ;;  %3628 = vpow2.f32 %v3013_v24  ;;  %v4952_v15 = vadd.f32 %v2249_v2, %v4899_v56  ;;  %v2251_v31 = vpop.f32.mrb[45].mxu0 }
 0x492   : > { %v3613_v53 = vpop.eup %3612  ;;  %3630 = vrcp.f32 %v2398_v37  ;;  %v2400_v0 = vadd.f32 1.0, %v3611_v5  ;;  %v4955_v62 = vadd.f32 %v2251_v31, %v4901_v63  ;;  %v2253_v52 = vpop.f32.mrb[46].mxu0 }
 0x493   : > { %3632 = vrcp.f32 %v2399_v40  ;;  %v2401_v44 = vadd.f32 1.0, %v3613_v53  ;;  %v3014_v26 = vmul.f32 -1.442695, %v4952_v15  ;;  %v4959_v45 = vadd.f32 %v2253_v52, %v4899_v56  ;;  %v2255_v29 = vpop.f32.mrb[47].mxu0 }
 0x494   : > { %v3615_v27 = vpop.eup %3614  ;;  %3634 = vrcp.f32 %v2400_v0  ;;  %v3015_v25 = vmul.f32 -1.442695, %v4955_v62  ;;  %v4963_v39 = vadd.f32 %v2255_v29, %v4901_v63 }
 0x495   : > { %v3617_v42 = vpop.eup %3616  ;;  %3636 = vrcp.f32 %v2401_v44  ;;  %v3016_v6 = vmul.f32 -1.442695, %v4959_v45  ;;  %v2490_v34 = vmul.f32 %v3615_v27, %v4904_v17 }
 0x496   : > { %v3619_v1 = vpop.eup %3618  ;;  %3638 = vpow2.f32 %v3014_v26  ;;  %v3017_v23 = vmul.f32 -1.442695, %v4963_v39  ;;  %v2491_v60 = vmul.f32 %v3617_v42, %v4907_v9 }
 0x497   : > { %v3621_v20 = vpop.eup %3620  ;;  %v2492_v61 = vmul.f32 %v3619_v1, %v4911_v21  ;;  %3640 = vpow2.f32 %v3015_v25 }
 0x498   : > { %v3623_v14 = vpop.eup %3622  ;;  %v2493_v57 = vmul.f32 %v3621_v20, %v4915_v28  ;;  %3642 = vpow2.f32 %v3016_v6 }
 0x499   : > { %v3625_v12 = vpop.eup %3624  ;;  %v2522_v8 = vpack.c.bf16 %v2492_v61, %v2490_v34  ;;  %v2402_v7 = vadd.f32 1.0, %v3623_v14  ;;  %3644 = vpow2.f32 %v3017_v23  ;;  %v2259_v46 = vpop.f32.mrb[48].mxu0 }
 0x49a   : > { %v3627_v24 = vpop.eup %3626  ;;  %v2403_v4 = vadd.f32 1.0, %v3625_v12  ;;  %v4972_v49 = vadd.f32 %v2259_v46, %v4899_v56  ;;  %v2261_v17 = vpop.f32.mrb[49].mxu0  ;;  %v2523_v37 = vpack.c.bf16 %v2493_v57, %v2491_v60 }
 0x49b   : > { %v3629_v21 = vpop.eup %3628  ;;  %3646 = vrcp.f32 %v2402_v7  ;;  %v2404_v2 = vadd.f32 1.0, %v3627_v24  ;;  %v4975_v9 = vadd.f32 %v2261_v17, %v4901_v63  ;;  %v2263_v28 = vpop.f32.mrb[50].mxu0 }
 0x49c   : > { %v3631_v5 = vpop.eup %3630  ;;  %3648 = vrcp.f32 %v2403_v4  ;;  %v2405_v40 = vadd.f32 1.0, %v3629_v21  ;;  %v3018_v31 = vmul.f32 -1.442695, %v4972_v49  ;;  %v4979_v53 = vadd.f32 %v2263_v28, %v4899_v56  ;;  %v2265_v0 = vpop.f32.mrb[51].mxu0  ;;  %2705 = vmatprep.mubr.bf16.mxu1 %v2523_v37 }
 0x49d   : > { %v3633_v52 = vpop.eup %3632  ;;  %3650 = vrcp.f32 %v2404_v2  ;;  %v3019_v44 = vmul.f32 -1.442695, %v4975_v9  ;;  %v4983_v26 = vadd.f32 %v2265_v0, %v4901_v63  ;;  %2706 = vmatmul.mubr.bf16.vlgmr.msra.gmra.mrb[32].mxu1 %v2522_v8  ;;  %v2494_v42 = vmul.f32 %v3631_v5, %v4920_v48 }
 0x49e   : > { %v3635_v29 = vpop.eup %3634  ;;  %3652 = vrcp.f32 %v2405_v40  ;;  %v3020_v27 = vmul.f32 -1.442695, %v4979_v53  ;;  %v2495_v20 = vmul.f32 %v3633_v52, %v4923_v47 }
 0x49f   : > { %v3637_v25 = vpop.eup %3636  ;;  %v2496_v6 = vmul.f32 %v3635_v29, %v4927_v19  ;;  %3654 = vpow2.f32 %v3018_v31  ;;  %v3021_v1 = vmul.f32 -1.442695, %v4983_v26 }
 0x4a0   : > { %v3639_v23 = vpop.eup %3638  ;;  %v2497_v34 = vmul.f32 %v3637_v25, %v4931_v10  ;;  %3656 = vpow2.f32 %v3019_v44 }
 0x4a1   : > { %v3641_v61 = vpop.eup %3640  ;;  %v2406_v14 = vadd.f32 1.0, %v3639_v23  ;;  %3658 = vpow2.f32 %v3020_v27  ;;  %v2269_v60 = vpop.f32.mrb[52].mxu0  ;;  %v2524_v57 = vpack.c.bf16 %v2496_v6, %v2494_v42 }
 0x4a2   : > { %v3643_v12 = vpop.eup %3642  ;;  %v2407_v8 = vadd.f32 1.0, %v3641_v61  ;;  %3660 = vpow2.f32 %v3021_v1  ;;  %v4992_v48 = vadd.f32 %v2269_v60, %v4899_v56  ;;  %v2271_v19 = vpop.f32.mrb[53].mxu0  ;;  %v2525_v7 = vpack.c.bf16 %v2497_v34, %v2495_v20 }
 0x4a3   : > { %v3645_v46 = vpop.eup %3644  ;;  %3662 = vrcp.f32 %v2406_v14  ;;  %v2408_v24 = vadd.f32 1.0, %v3643_v12  ;;  %v4995_v47 = vadd.f32 %v2271_v19, %v4901_v63  ;;  %v2273_v10 = vpop.f32.mrb[54].mxu0 }
 0x4a4   : > { %3664 = vrcp.f32 %v2407_v8  ;;  %v2409_v4 = vadd.f32 1.0, %v3645_v46  ;;  %v3022_v17 = vmul.f32 -1.442695, %v4992_v48  ;;  %v4999_v37 = vadd.f32 %v2273_v10, %v4899_v56  ;;  %v2275_v21 = vpop.f32.mrb[55].mxu0  ;;  %2713 = vmatprep.mubr.bf16.mxu1 %v2525_v7 }
 0x4a5   : > { %v3647_v2 = vpop.eup %3646  ;;  %3666 = vrcp.f32 %v2408_v24  ;;  %v3023_v28 = vmul.f32 -1.442695, %v4995_v47  ;;  %v5003_v5 = vadd.f32 %v2275_v21, %v4901_v63  ;;  %2714 = vmatmul.mubr.bf16.gmra.mrb[36].mxu1 %v2524_v57 }
 0x4a6   : > { %v3649_v40 = vpop.eup %3648  ;;  %3668 = vrcp.f32 %v2409_v4  ;;  %v3024_v31 = vmul.f32 -1.442695, %v4999_v37  ;;  %v2498_v29 = vmul.f32 %v3647_v2, %v4936_v51 }
 0x4a7   : > { %v3651_v0 = vpop.eup %3650  ;;  %3670 = vpow2.f32 %v3022_v17  ;;  %v3025_v52 = vmul.f32 -1.442695, %v5003_v5  ;;  %v2499_v42 = vmul.f32 %v3649_v40, %v4939_v41 }
 0x4a8   : > { %v3653_v44 = vpop.eup %3652  ;;  %v2500_v27 = vmul.f32 %v3651_v0, %v4943_v38  ;;  %3672 = vpow2.f32 %v3023_v28 }
 0x4a9   : > { %v3655_v25 = vpop.eup %3654  ;;  %v2501_v6 = vmul.f32 %v3653_v44, %v4947_v3  ;;  %3674 = vpow2.f32 %v3024_v31  ;;  %v2279_v1 = vpop.f32.mrb[56].mxu0 }
 0x4aa   : > { %v3657_v23 = vpop.eup %3656  ;;  %v2410_v20 = vadd.f32 1.0, %v3655_v25  ;;  %3676 = vpow2.f32 %v3025_v52  ;;  %v5012_v34 = vadd.f32 %v2279_v1, %v4899_v56  ;;  %v2281_v61 = vpop.f32.mrb[57].mxu0  ;;  %v2526_v14 = vpack.c.bf16 %v2500_v27, %v2498_v29 }
 0x4ab   : > { %v3659_v60 = vpop.eup %3658  ;;  %v2411_v51 = vadd.f32 1.0, %v3657_v23  ;;  %v5015_v38 = vadd.f32 %v2281_v61, %v4901_v63  ;;  %v2283_v57 = vpop.f32.mrb[58].mxu0  ;;  %v2527_v12 = vpack.c.bf16 %v2501_v6, %v2499_v42 }
 0x4ac   : > { %v3661_v41 = vpop.eup %3660  ;;  %3678 = vrcp.f32 %v2410_v20  ;;  %v2412_v3 = vadd.f32 1.0, %v3659_v60  ;;  %v3026_v8 = vmul.f32 -1.442695, %v5012_v34  ;;  %v5019_v19 = vadd.f32 %v2283_v57, %v4899_v56  ;;  %v2285_v7 = vpop.f32.mrb[59].mxu0 }
 0x4ad   : > { %v3663_v46 = vpop.eup %3662  ;;  %3680 = vrcp.f32 %v2411_v51  ;;  %v2413_v24 = vadd.f32 1.0, %v3661_v41  ;;  %v3027_v10 = vmul.f32 -1.442695, %v5015_v38  ;;  %v5023_v4 = vadd.f32 %v2285_v7, %v4901_v63  ;;  %2721 = vmatprep.mubr.bf16.mxu1 %v2527_v12 }
 0x4ae   : > { %v3665_v17 = vpop.eup %3664  ;;  %3682 = vrcp.f32 %v2412_v3  ;;  %v3028_v21 = vmul.f32 -1.442695, %v5019_v19  ;;  %2722 = vmatmul.mubr.bf16.gmra.mrb[40].mxu1 %v2526_v14  ;;  %v2502_v31 = vmul.f32 %v3663_v46, %v4952_v15 }
 0x4af   : > { %v3667_v2 = vpop.eup %3666  ;;  %3684 = vrcp.f32 %v2413_v24  ;;  %v3029_v28 = vmul.f32 -1.442695, %v5023_v4  ;;  %v2503_v44 = vmul.f32 %v3665_v17, %v4955_v62 }
 0x4b0   : > { %v3669_v40 = vpop.eup %3668  ;;  %v2504_v0 = vmul.f32 %v3667_v2, %v4959_v45  ;;  %3686 = vpow2.f32 %v3026_v8 }
 0x4b1   : > { %v3671_v52 = vpop.eup %3670  ;;  %v2505_v29 = vmul.f32 %v3669_v40, %v4963_v39  ;;  %3688 = vpow2.f32 %v3027_v10  ;;  %v2289_v27 = vpop.f32.mrb[60].mxu0 }
 0x4b2   : > { %v3673_v25 = vpop.eup %3672  ;;  %v2414_v42 = vadd.f32 1.0, %v3671_v52  ;;  %3690 = vpow2.f32 %v3028_v21  ;;  %v5032_v6 = vadd.f32 %v2289_v27, %v4899_v56  ;;  %v2291_v1 = vpop.f32.mrb[61].mxu0  ;;  %v2528_v23 = vpack.c.bf16 %v2504_v0, %v2502_v31 }
 0x4b3   : > { %v3675_v20 = vpop.eup %3674  ;;  %v2415_v15 = vadd.f32 1.0, %v3673_v25  ;;  %3692 = vpow2.f32 %v3029_v28  ;;  %v5035_v45 = vadd.f32 %v2291_v1, %v4901_v63  ;;  %v2293_v61 = vpop.f32.mrb[62].mxu0  ;;  %v2529_v62 = vpack.c.bf16 %v2505_v29, %v2503_v44 }
 0x4b4   : > { %v3677_v14 = vpop.eup %3676  ;;  %3694 = vrcp.f32 %v2414_v42  ;;  %v2416_v39 = vadd.f32 1.0, %v3675_v20  ;;  %v3030_v60 = vmul.f32 -1.442695, %v5032_v6  ;;  %v5039_v51 = vadd.f32 %v2293_v61, %v4899_v56  ;;  %v2295_v57 = vpop.f32.mrb[63].mxu0 }
 0x4b5   : > { %3696 = vrcp.f32 %v2415_v15  ;;  %v2417_v12 = vadd.f32 1.0, %v3677_v14  ;;  %v3031_v41 = vmul.f32 -1.442695, %v5035_v45  ;;  %v5043_v3 = vadd.f32 %v2295_v57, %v4901_v63  ;;  %2729 = vmatprep.mubr.bf16.mxu1 %v2529_v62 }
 0x4b6   : > { %v3679_v8 = vpop.eup %3678  ;;  %3698 = vrcp.f32 %v2416_v39  ;;  %v3032_v7 = vmul.f32 -1.442695, %v5039_v51  ;;  %2730 = vmatmul.mubr.bf16.gmra.mrb[44].mxu1 %v2528_v23 }
 0x4b7   : > { %v3681_v46 = vpop.eup %3680  ;;  %3700 = vrcp.f32 %v2417_v12  ;;  %v3033_v24 = vmul.f32 -1.442695, %v5043_v3  ;;  %v2506_v17 = vmul.f32 %v3679_v8, %v4972_v49 }
 0x4b8   : > { %v3683_v56 = vpop.eup %3682  ;;  %3702 = vpow2.f32 %v3030_v60  ;;  %v2507_v2 = vmul.f32 %v3681_v46, %v4975_v9 }
 0x4b9   : > { %v3685_v10 = vpop.eup %3684  ;;  %v2508_v21 = vmul.f32 %v3683_v56, %v4979_v53  ;;  %3704 = vpow2.f32 %v3031_v41 }
 0x4ba   : > { %v3687_v63 = vpop.eup %3686  ;;  %v2509_v28 = vmul.f32 %v3685_v10, %v4983_v26  ;;  %3706 = vpow2.f32 %v3032_v7 }
 0x4bb   : > { %v3689_v40 = vpop.eup %3688  ;;  %v2418_v31 = vadd.f32 1.0, %v3687_v63  ;;  %3708 = vpow2.f32 %v3033_v24  ;;  %v2530_v0 = vpack.c.bf16 %v2508_v21, %v2506_v17 }
 0x4bc   : > { %v3691_v52 = vpop.eup %3690  ;;  %v2419_v44 = vadd.f32 1.0, %v3689_v40  ;;  %v2531_v29 = vpack.c.bf16 %v2509_v28, %v2507_v2 }
 0x4bd   : > { %v3693_v27 = vpop.eup %3692  ;;  %3710 = vrcp.f32 %v2418_v31  ;;  %v2420_v25 = vadd.f32 1.0, %v3691_v52 }
 0x4be   : > { %v3695_v49 = vpop.eup %3694  ;;  %3712 = vrcp.f32 %v2419_v44  ;;  %v2421_v53 = vadd.f32 1.0, %v3693_v27  ;;  %2737 = vmatprep.mubr.bf16.mxu1 %v2531_v29  ;;  %v5066_v44 = vld [vmem:[%s5211_s14] ss:$0 sm:$0xff] }
 0x4bf   : > { %v3697_v42 = vpop.eup %3696  ;;  %3714 = vrcp.f32 %v2420_v25  ;;  %2738 = vmatmul.mubr.bf16.gmra.mrb[48].mxu1 %v2530_v0  ;;  %v2510_v1 = vmul.f32 %v3695_v49, %v4992_v48 }
 0x4c0   : > { %v3699_v9 = vpop.eup %3698  ;;  %3716 = vrcp.f32 %v2421_v53  ;;  %v2511_v15 = vmul.f32 %v3697_v42, %v4995_v47 }
 0x4c1   : > { %v3701_v26 = vpop.eup %3700  ;;  %v2512_v23 = vmul.f32 %v3699_v9, %v4999_v37 }
 0x4c2   : > { %v3703_v20 = vpop.eup %3702  ;;  %v2513_v61 = vmul.f32 %v3701_v26, %v5003_v5 }
 0x4c3   : > { %v3705_v62 = vpop.eup %3704  ;;  %v2422_v14 = vadd.f32 1.0, %v3703_v20  ;;  %v2532_v39 = vpack.c.bf16 %v2512_v23, %v2510_v1 }
 0x4c4   : > { %v3707_v60 = vpop.eup %3706  ;;  %v2423_v57 = vadd.f32 1.0, %v3705_v62  ;;  %v2533_v12 = vpack.c.bf16 %v2513_v61, %v2511_v15 }
 0x4c5   : > { %v3709_v41 = vpop.eup %3708  ;;  %3718 = vrcp.f32 %v2422_v14  ;;  %v2424_v8 = vadd.f32 1.0, %v3707_v60 }
 0x4c6   : > { %3720 = vrcp.f32 %v2423_v57  ;;  %v2425_v7 = vadd.f32 1.0, %v3709_v41  ;;  %2745 = vmatprep.mubr.bf16.mxu1 %v2533_v12 }
 0x4c7   : > { %v3711_v48 = vpop.eup %3710  ;;  %3722 = vrcp.f32 %v2424_v8  ;;  %2746 = vmatmul.mubr.bf16.gmra.mrb[52].mxu1 %v2532_v39 }
 0x4c8   : > { %v3713_v37 = vpop.eup %3712  ;;  %3724 = vrcp.f32 %v2425_v7  ;;  %v2514_v5 = vmul.f32 %v3711_v48, %v5012_v34 }
 0x4c9   : > { %v3715_v47 = vpop.eup %3714  ;;  %v2515_v56 = vmul.f32 %v3713_v37, %v5015_v38 }
 0x4ca   : > { %v3717_v46 = vpop.eup %3716  ;;  %v2516_v24 = vmul.f32 %v3715_v47, %v5019_v19 }
 0x4cb   : > { %v2517_v10 = vmul.f32 %v3717_v46, %v5023_v4 }
 0x4cc   : > { %v2534_v17 = vpack.c.bf16 %v2516_v24, %v2514_v5 }
 0x4cd   : > { %v2535_v21 = vpack.c.bf16 %v2517_v10, %v2515_v56 }
 0x4cf   : > { %v3719_v63 = vpop.eup %3718  ;;  %2753 = vmatprep.mubr.bf16.mxu1 %v2535_v21 }
 0x4d0   : > { %v3721_v2 = vpop.eup %3720  ;;  %2754 = vmatmul.mubr.bf16.gmra.mrb[56].mxu1 %v2534_v17  ;;  %v2518_v31 = vmul.f32 %v3719_v63, %v5032_v6 }
 0x4d1   : > { %v3723_v28 = vpop.eup %3722  ;;  %v2519_v34 = vmul.f32 %v3721_v2, %v5035_v45 }
 0x4d2   : > { %v3725_v40 = vpop.eup %3724  ;;  %v2520_v0 = vmul.f32 %v3723_v28, %v5039_v51 }
 0x4d3   : > { %v2521_v19 = vmul.f32 %v3725_v40, %v5043_v3 }
 0x4d4   : > { %v2536_v38 = vpack.c.bf16 %v2520_v0, %v2518_v31 }
 0x4d5   : > { %v2537_v52 = vpack.c.bf16 %v2521_v19, %v2519_v34 }
 0x4d7   : > { %2761 = vmatprep.mubr.bf16.mxu1 %v2537_v52 }
 0x4d8   : > { %2762 = vmatmul.mubr.bf16.gmra.mrb[60].mxu1 %v2536_v38 }
 0x570   : > { %v3125_v4 = vpop.f32.mrb[32].mxu1 }
 0x571   : > { %v3126_v29 = vpop.f32.mrb[33].mxu1 }
 0x572   : > { %v3127_v27 = vadd.f32 %v3126_v29, %v3125_v4  ;;  %v3128_v6 = vpop.f32.mrb[34].mxu1 }
 0x573   : > { %v3129_v25 = vpop.f32.mrb[35].mxu1 }
 0x574   : > { %v2708_v51 = vadd.f32 %v3127_v27, %v5066_v44  ;;  %v3130_v45 = vadd.f32 %v3129_v25, %v3128_v6 }
 0x576   : > { %v2770_v49 = vadd.f32 %v2708_v51, %v4671_v13  ;;  %v2711_v3 = vadd.f32 %v3130_v45, %v5066_v44 }
 0x578   : > { %2786 = vst [vmem:[%s5073_s16] sm:$0xff] %v2770_v49  ;;  %v2771_v53 = vadd.f32 %v2711_v3, %v4675_v18  ;;  %v3131_v42 = vpop.f32.mrb[36].mxu1 }
 0x579   : > { %v3132_v9 = vpop.f32.mrb[37].mxu1 }
 0x57a   : > { %2787 = vst [vmem:[%s5073_s16 + $0x8] sm:$0xff] %v2771_v53  ;;  %v3133_v26 = vadd.f32 %v3132_v9, %v3131_v42  ;;  %v3134_v1 = vpop.f32.mrb[38].mxu1 }
 0x57b   : > { %v3135_v23 = vpop.f32.mrb[39].mxu1 }
 0x57c   : > { %v2716_v13 = vadd.f32 %v3133_v26, %v5066_v44  ;;  %v3136_v20 = vadd.f32 %v3135_v23, %v3134_v1 }
 0x57e   : > { %v2772_v15 = vadd.f32 %v2716_v13, %v4683_v32  ;;  %v2719_v61 = vadd.f32 %v3136_v20, %v5066_v44 }
 0x580   : > { %2788 = vst [vmem:[%s5073_s16 + $0x10] sm:$0xff] %v2772_v15  ;;  %v2773_v62 = vadd.f32 %v2719_v61, %v4690_v58 }
 0x581   : > { %v3137_v14 = vpop.f32.mrb[40].mxu1 }
 0x582   : > { %2789 = vst [vmem:[%s5073_s16 + $0x18] sm:$0xff] %v2773_v62  ;;  %v3138_v18 = vpop.f32.mrb[41].mxu1 }
 0x583   : > { %v3139_v39 = vadd.f32 %v3138_v18, %v3137_v14  ;;  %v3140_v60 = vpop.f32.mrb[42].mxu1 }
 0x584   : > { %v3141_v57 = vpop.f32.mrb[43].mxu1 }
 0x585   : > { %v2724_v12 = vadd.f32 %v3139_v39, %v5066_v44  ;;  %v3142_v41 = vadd.f32 %v3141_v57, %v3140_v60 }
 0x587   : > { %v2774_v8 = vadd.f32 %v2724_v12, %v4699_v50  ;;  %v2727_v32 = vadd.f32 %v3142_v41, %v5066_v44 }
 0x589   : > { %2790 = vst [vmem:[%s5073_s16 + $0x20] sm:$0xff] %v2774_v8  ;;  %v2775_v7 = vadd.f32 %v2727_v32, %v4704_v22  ;;  %v3143_v48 = vpop.f32.mrb[44].mxu1 }
 0x58a   : > { %v3144_v58 = vpop.f32.mrb[45].mxu1 }
 0x58b   : > { %2791 = vst [vmem:[%s5073_s16 + $0x28] sm:$0xff] %v2775_v7  ;;  %v3145_v37 = vadd.f32 %v3144_v58, %v3143_v48  ;;  %v3146_v47 = vpop.f32.mrb[46].mxu1 }
 0x58c   : > { %v3147_v46 = vpop.f32.mrb[47].mxu1 }
 0x58d   : > { %v2732_v5 = vadd.f32 %v3145_v37, %v5066_v44  ;;  %v3148_v24 = vadd.f32 %v3147_v46, %v3146_v47 }
 0x58f   : > { %v2776_v56 = vadd.f32 %v2732_v5, %v4713_v43  ;;  %v2735_v50 = vadd.f32 %v3148_v24, %v5066_v44 }
 0x591   : > { %2792 = vst [vmem:[%s5073_s16 + $0x30] sm:$0xff] %v2776_v56  ;;  %v2777_v10 = vadd.f32 %v2735_v50, %v4718_v54 }
 0x592   : > { %v3149_v17 = vpop.f32.mrb[48].mxu1 }
 0x593   : > { %2793 = vst [vmem:[%s5073_s16 + $0x38] sm:$0xff] %v2777_v10  ;;  %v3150_v22 = vpop.f32.mrb[49].mxu1 }
 0x594   : > { %v3151_v21 = vadd.f32 %v3150_v22, %v3149_v17  ;;  %v3152_v63 = vpop.f32.mrb[50].mxu1 }
 0x595   : > { %v3153_v2 = vpop.f32.mrb[51].mxu1 }
 0x596   : > { %v2740_v28 = vadd.f32 %v3151_v21, %v5066_v44  ;;  %v3154_v40 = vadd.f32 %v3153_v2, %v3152_v63 }
 0x598   : > { %v2778_v31 = vadd.f32 %v2740_v28, %v4727_v35  ;;  %v2743_v43 = vadd.f32 %v3154_v40, %v5066_v44 }
 0x59a   : > { %2794 = vst [vmem:[%s5073_s16 + $0x40] sm:$0xff] %v2778_v31  ;;  %v2779_v0 = vadd.f32 %v2743_v43, %v4731_v30  ;;  %v3155_v34 = vpop.f32.mrb[52].mxu1 }
 0x59b   : > { %v3156_v54 = vpop.f32.mrb[53].mxu1 }
 0x59c   : > { %2795 = vst [vmem:[%s5073_s16 + $0x48] sm:$0xff] %v2779_v0  ;;  %v3157_v19 = vadd.f32 %v3156_v54, %v3155_v34  ;;  %v3158_v38 = vpop.f32.mrb[54].mxu1 }
 0x59d   : > { %v3159_v52 = vpop.f32.mrb[55].mxu1 }
 0x59e   : > { %v2748_v4 = vadd.f32 %v3157_v19, %v5066_v44  ;;  %v3160_v29 = vadd.f32 %v3159_v52, %v3158_v38 }
 0x5a0   : > { %v2780_v27 = vadd.f32 %v2748_v4, %v4741_v33  ;;  %v2751_v35 = vadd.f32 %v3160_v29, %v5066_v44 }
 0x5a2   : > { %2796 = vst [vmem:[%s5073_s16 + $0x50] sm:$0xff] %v2780_v27  ;;  %v2781_v6 = vadd.f32 %v2751_v35, %v4745_v36 }
 0x5a3   : > { %v3161_v25 = vpop.f32.mrb[56].mxu1 }
 0x5a4   : > { %2797 = vst [vmem:[%s5073_s16 + $0x58] sm:$0xff] %v2781_v6  ;;  %v3162_v30 = vpop.f32.mrb[57].mxu1 }
 0x5a5   : > { %v3163_v51 = vadd.f32 %v3162_v30, %v3161_v25  ;;  %v3164_v45 = vpop.f32.mrb[58].mxu1 }
 0x5a6   : > { %v3165_v49 = vpop.f32.mrb[59].mxu1 }
 0x5a7   : > { %v2756_v3 = vadd.f32 %v3163_v51, %v5066_v44  ;;  %v3166_v53 = vadd.f32 %v3165_v49, %v3164_v45 }
 0x5a9   : > { %v2782_v42 = vadd.f32 %v2756_v3, %v4755_v59  ;;  %v2759_v33 = vadd.f32 %v3166_v53, %v5066_v44 }
 0x5ab   : > { %2798 = vst [vmem:[%s5073_s16 + $0x60] sm:$0xff] %v2782_v42  ;;  %v2783_v9 = vadd.f32 %v2759_v33, %v4759_v55  ;;  %v3167_v36 = vpop.f32.mrb[60].mxu1 }
 0x5ac   : > { %v3168_v26 = vpop.f32.mrb[61].mxu1 }
 0x5ad   : > { %2799 = vst [vmem:[%s5073_s16 + $0x68] sm:$0xff] %v2783_v9  ;;  %v3169_v1 = vadd.f32 %v3168_v26, %v3167_v36  ;;  %v3170_v23 = vpop.f32.mrb[62].mxu1 }
 0x5ae   : > { %v3171_v13 = vpop.f32.mrb[63].mxu1 }
 0x5af   : > { %v2764_v20 = vadd.f32 %v3169_v1, %v5066_v44  ;;  %v3172_v15 = vadd.f32 %v3171_v13, %v3170_v23 }
 0x5b1   : > { %v2784_v59 = vadd.f32 %v2764_v20, %v4769_v11  ;;  %v2767_v61 = vadd.f32 %v3172_v15, %v5066_v44 }
 0x5b3   : > { %2800 = vst [vmem:[%s5073_s16 + $0x70] sm:$0xff] %v2784_v59  ;;  %v2785_v55 = vadd.f32 %v2767_v61, %v4773_v16 }
 0x5b5   : > { %2801 = vst [vmem:[%s5073_s16 + $0x78] sm:$0xff] %v2785_v55 }
 0x5b6   : > { %3841 = shalt.err (!%p3838_p1)
}
 0x5b7   : > { %s3842_s14 = scalar_lea.hbm %s5122_s21, 2048  ;;  %s3846_s25 = scalar_lea.hbm %s5212_s24, 4096 }
 0x5b8   : > { %p3843_p13 = scmp.ne.s32.totalorder %s5122_s21, %s3842_s14  ;;  %p3847_p4 = scmp.lt.u32.totalorder %s5122_s21, %s5212_s24 }
 0x5b9   : > { %p3848_p7 = scmp.lt.u32.totalorder %s3846_s25, %s3842_s14  ;;  %p3850_p11 = scmp.lt.u32.totalorder %s3842_s14, %s5122_s21 }
 0x5ba   : > { %p3844_p6 = pnand %p3843_p13, %p5213_p0 }
 0x5bb   : > { %p3849_p8 = por %p3848_p7, %p3847_p4 }
 0x5bc   : > { %p3845_p10 = pneg %p3844_p6 }
 0x5bd   : > { %p3851_p2 = por %p3850_p11, %p3849_p8 }
 0x5bf   : > { %p3852_p3 = pnand %p3851_p2, %p3845_p10 }
 0x5c1   : > { %3855 = shalt.err (!%p3852_p3)
}
 0x5c2   : > { %s3911_s12 = smov 128   ;;  %s3912_s10 = smov 8  }
 0x5c3   : > { %3295 = dma.vmem_to_hbm [thread:$0]  (%p5213_p0), %s5124_s30, 2048, %s5122_s21, %s2803_s29, %s3911_s12, %s3911_s12, %s3912_s10  }
 0x5c4 PF: > { %s5214_s18 = sld [smem:[#allocation12_spill]]  ;;  %s5215_s16 = sld [smem:[#allocation13_spill]] }
 0x5c5   : > { %p5217_p9 = scmp.ge.s32.totalorder %s3898_s28, 2 }
 0x5ca   : > { %s2832_s19 = sand.u32 1, %s5214_s18   ;;  %p5216_p5 = scmp.ne.s32.totalorder %s5215_s16, 0 }
 0x5cb   : > { %s2833_s14 = scalar_lea.sflag [#allocation4], %s2832_s19 }
 0x5cc   : > { %p3309_p12 = pnand %p5217_p9, %p5216_p5 }
 0x5ce   : > { %3881 = dma.done.wait (!%p3309_p12), %s2833_s14, 2048  }
 0x5cf   : > { %3883 = vsyncadd (!%p3309_p12), %s2833_s14, 4294965248  ;;  %p27_p1 = scmp.ge.s32.totalorder %s4096_s23, 4   ;;  %s5218_s25 = smov %s3890_s26 }
 0x5d0   : > { %s5219_s26 = smov %s3894_s27  ;;  %s5220_s27 = smov %s4105_s17 }
 0x5d1   : > { %s5221_s28 = smov %s4096_s23  ;;  %29 = sbr.rel (!%p27_p1) target bundleno = 10 (0xa), region = 125 }
 0x5d8   :  { %2838 = vsyncpa [#allocation3], 1 }
 0x5d9   :  { %2840 = vsyncpa [#allocation3 + $0x1], 1 }
 0x5da   :  { %2841 = vsyncpa [#allocation6], 1 }
 0x5db   :  { %2842 = vsyncpa [#allocation4], 1 }
 0x5dc   :  { %2844 = vsyncpa [#allocation4 + $0x1], 1 }

</bundles_post_ra>
